<compile_context>
chip_gen: v6e
topology: v6e:2x2x1
jax: 0.10.0
libtpu: 0.0.40
codegen_flags: <defaults>
</compile_context>

<pallas_src>
import functools

import numpy as np

import jax
import jax.numpy as jnp
from jax.experimental import pallas as pl
from jax.experimental.pallas import tpu as pltpu


def _mxu_bf16_default():
    """bf16 MXU operands pay off on v6e/v7x (bf16-native 256x256 MXUs)."""
    try:
        kind = jax.devices()[0].device_kind.lower()
    except Exception:
        return False
    return any(tag in kind for tag in ("v6", "v7", "7x"))


def _interp_schedule(T, time_steps):
    """Static fixed-grid linear-interp schedule for eval times linspace(0,T,N).

    Exact node hits are normalised to frac == 0.0 so they reproduce the solver
    grid state bit-exactly (in particular the last point is exactly x(T))."""
    dt = T / time_steps
    lo_idx, fracs = [], []
    for t in np.linspace(0.0, T, time_steps):
        i = int(np.floor(t / dt + 1e-9))
        f = (t - i * dt) / dt
        if f >= 1.0 - 1e-9:
            i, f = i + 1, 0.0
        if f <= 1e-9:
            f = 0.0
        i = min(max(i, 0), time_steps)
        lo_idx.append(int(i))
        fracs.append(float(f))
    return tuple(lo_idx), tuple(fracs)


# ---------------------------------------------------------------------------
# Fused kernel: midpoint integration of x'(t) = tanh(x) @ W_k.T + b_k,
# one batched linear-head projection of all grid states, and the fixed-grid
# trajectory interpolation done directly in (lane-padded) output space.
# ---------------------------------------------------------------------------
def _fused_node_kernel(x0_ref, w_ref, b_ref, wlin_ref, blin_ref,
                       traj_ref, x_scr,
                       *, dt, time_steps, eval_lo, eval_frac, hardtanh,
                       mxu_bf16):
    B, H = x0_ref.shape
    mxu_dtype = jnp.bfloat16 if mxu_bf16 else jnp.float32

    # Hoisted broadcast: ONE broadcast_in_dim for all per-step biases.
    b_all = jnp.broadcast_to(b_ref[...], (time_steps, B, H))   # (N, B, H)

    x = x0_ref[...].astype(jnp.float32)
    x_scr[pl.ds(0, B), :] = x

    # torchdiffeq midpoint, fixed step dt: both f-evals of step k happen at
    # times k*dt and k*dt + dt/2, so both select weight index k (matches the
    # reference's int(t/dt) for this schedule).  State stays f32; only MXU
    # operands are cast (f32 accumulation via preferred_element_type).
    for k in range(time_steps):            # static unroll; time_steps is small
        w = w_ref[k].astype(mxu_dtype)     # (H, H), pre-transposed
        b = b_all[k]                       # (B, H)
        k1 = jnp.dot(jnp.tanh(x).astype(mxu_dtype), w,
                     preferred_element_type=jnp.float32) + b
        x_mid = x + (0.5 * dt) * k1
        k2 = jnp.dot(jnp.tanh(x_mid).astype(mxu_dtype), w,
                     preferred_element_type=jnp.float32) + b
        x = x + dt * k2
        x_scr[pl.ds((k + 1) * B, B), :] = x

    # Batched linear head: ONE ((N+1)*B, H) @ (H, O_pad) matmul projects every
    # grid state.  The head is zero-padded to O_pad = 128 lanes so all stores
    # below are full-lane unmasked vst.
    ys = (jnp.dot(x_scr[...], wlin_ref[...],
                  preferred_element_type=jnp.float32) + blin_ref[...])

    # Fixed-grid trajectory interpolation at the static eval schedule, done in
    # output space (the affine head commutes with a convex combination).
    # frac == 0 entries pass the projected grid state through unchanged, so
    # traj[-1] == linear(x(T)) exactly (it doubles as `pred`).
    parts = []
    for j in range(time_steps):
        i, f = eval_lo[j], eval_frac[j]
        y_lo = ys[i * B:(i + 1) * B]
        if f == 0.0:
            parts.append(y_lo)
        else:
            y_hi = ys[(i + 1) * B:(i + 2) * B]
            parts.append(y_lo + f * (y_hi - y_lo))
    traj = jnp.stack(parts)                # (time_steps, B, O_pad)
    if hardtanh:                           # nn.Hardtanh(-1, 1) path
        traj = jnp.clip(traj, -1.0, 1.0)
    traj_ref[...] = traj                   # single lane-dense store


# ---------------------------------------------------------------------------
# NeuralODE forward
# ---------------------------------------------------------------------------
def neural_ode_forward(params, x, *, T, time_steps, output_dim,
                       cross_entropy=True, mxu_bf16=None):
    B, H = x.shape
    w_ode_t = params["w_ode_t"]            # (N, H, H) pre-transposed
    b_ode = params["b_ode"]                # (N, 1, H)
    w_lin_pad = params["w_lin_pad"]        # (H, O_pad) pre-transposed, padded
    b_lin_pad = params["b_lin_pad"]        # (1, O_pad)
    O_pad = w_lin_pad.shape[1]

    if mxu_bf16 is None:
        mxu_bf16 = _mxu_bf16_default()

    # Guardrail: the whole weight stack is kept VMEM-resident.  On v7x
    # (64 MiB VMEM, ~32 MiB scoped default) large stacks must instead be
    # streamed with a time_steps grid / pl.Buffered per-step weight fetch.
    resident_bytes = 4 * (w_ode_t.size + b_ode.size + w_lin_pad.size
                          + b_lin_pad.size + x.size
                          + (time_steps + 1) * B * H
                          + time_steps * B * O_pad)
    assert resident_bytes < 16 * 1024 * 1024, (
        "weight stack too large for VMEM residency; stream per-step weights")
    # TODO(synk): add a time_steps-grid streaming path for very large stacks.

    eval_lo, eval_frac = _interp_schedule(float(T), int(time_steps))

    kernel = functools.partial(
        _fused_node_kernel,
        dt=float(T) / float(time_steps),
        time_steps=int(time_steps),
        eval_lo=eval_lo, eval_frac=eval_frac,
        hardtanh=not cross_entropy,
        mxu_bf16=bool(mxu_bf16))

    vmem = pl.BlockSpec(memory_space=pltpu.MemorySpace.VMEM)
    traj_pad = pl.pallas_call(
        kernel,
        out_shape=jax.ShapeDtypeStruct((time_steps, B, O_pad), jnp.float32),
        in_specs=[vmem] * 5,
        out_specs=vmem,
        scratch_shapes=[pltpu.VMEM(((time_steps + 1) * B, H), jnp.float32)],
    )(x, w_ode_t, b_ode, w_lin_pad, b_lin_pad)

    proj_traj = traj_pad[:, :, :output_dim]     # (time_steps, B, O)
    pred = proj_traj[time_steps - 1]            # == linear(x(T)) exactly
    return pred, proj_traj


def init_params(key, hidden_dim, output_dim, time_steps):
    """Deterministic init mimicking nn.Linear's U(-1/sqrt(fan_in), 1/sqrt(fan_in)).

    The linear head is pre-transposed and zero-padded to a 128-lane width once
    here, so the per-call path never pads / transposes anything."""
    k1, k2, k3, k4 = jax.random.split(key, 4)
    s = 1.0 / np.sqrt(float(hidden_dim))
    w_ode = jax.random.uniform(k1, (time_steps, hidden_dim, hidden_dim),
                               jnp.float32, -s, s)
    b_ode = jax.random.uniform(k2, (time_steps, 1, hidden_dim),
                               jnp.float32, -s, s)
    w_lin = jax.random.uniform(k3, (output_dim, hidden_dim), jnp.float32, -s, s)
    b_lin = jax.random.uniform(k4, (1, output_dim), jnp.float32, -s, s)

    o_pad = ((output_dim + 127) // 128) * 128
    w_lin_pad = jnp.zeros((hidden_dim, o_pad), jnp.float32)
    w_lin_pad = w_lin_pad.at[:, :output_dim].set(w_lin.T)
    b_lin_pad = jnp.zeros((1, o_pad), jnp.float32)
    b_lin_pad = b_lin_pad.at[:, :output_dim].set(b_lin)

    return {
        "w_ode_t": jnp.transpose(w_ode, (0, 2, 1)),  # y = x @ W_t
        "b_ode": b_ode,
        "w_lin_pad": w_lin_pad,
        "b_lin_pad": b_lin_pad,
    }


if __name__ == "__main__":
    # 'inside' architecture requires input_dim == hidden_dim (augment_dim = 0).
    B, H, OUT, TIME_STEPS, T = 8, 32, 4, 10, 10.0

    key = jax.random.PRNGKey(0)
    kx, kp = jax.random.split(key)
    x = jax.random.normal(kx, (B, H), jnp.float32)
    params = init_params(kp, hidden_dim=H, output_dim=OUT,
                         time_steps=TIME_STEPS)

    fwd = jax.jit(functools.partial(neural_ode_forward, T=T,
                                    time_steps=TIME_STEPS, output_dim=OUT,
                                    cross_entropy=True))
    pred, proj_traj = fwd(params, x)
    jax.block_until_ready((pred, proj_traj))

    assert pred.shape == (B, OUT)
    assert proj_traj.shape == (TIME_STEPS, B, OUT)
    assert bool(jnp.all(jnp.isfinite(pred)))
    assert bool(jnp.all(jnp.isfinite(proj_traj)))
    print("KERNEL_OK")
</pallas_src>

<mosaic_0001>
module attributes {stable_mosaic.version = 11 : i64} {
  func.func @_fused_node_kernel(%arg0: memref<8x32xf32, #tpu.memory_space<vmem>>, %arg1: memref<10x32x32xf32, #tpu.memory_space<vmem>>, %arg2: memref<10x1x32xf32, #tpu.memory_space<vmem>>, %arg3: memref<32x128xf32, #tpu.memory_space<vmem>>, %arg4: memref<1x128xf32, #tpu.memory_space<vmem>>, %arg5: memref<10x8x128xf32, #tpu.memory_space<vmem>>, %arg6: memref<88x32xf32, #tpu.memory_space<vmem>>) attributes {dimension_semantics = [], scalar_prefetch = 0 : i64, scratch_operands = 1 : i64, tpu.core_type = #tpu.core_type<tc>} {
    %c0 = arith.constant 0 : index
    %c0_0 = arith.constant 0 : index
    %c0_1 = arith.constant 0 : index
    %0 = vector.load %arg2[%c0, %c0_0, %c0_1] : memref<10x1x32xf32, #tpu.memory_space<vmem>>, vector<10x1x32xf32>
    %1 = vector.shape_cast %0 : vector<10x1x32xf32> to vector<10x1x32xf32>
    %2 = vector.broadcast %1 : vector<10x1x32xf32> to vector<10x8x32xf32>
    %c0_2 = arith.constant 0 : index
    %c0_3 = arith.constant 0 : index
    %3 = vector.load %arg0[%c0_2, %c0_3] : memref<8x32xf32, #tpu.memory_space<vmem>>, vector<8x32xf32>
    %c0_4 = arith.constant 0 : index
    %c0_5 = arith.constant 0 : index
    %4 = vector.load %arg6[%c0_4, %c0_5] : memref<88x32xf32, #tpu.memory_space<vmem>>, vector<8x32xf32>
    tpu.vector_store %arg6[%c0_4, %c0_5], %3 {strides = array<i32>} : memref<88x32xf32, #tpu.memory_space<vmem>>, vector<8x32xf32>,
    %c0_6 = arith.constant 0 : index
    %c0_7 = arith.constant 0 : index
    %c0_8 = arith.constant 0 : index
    %5 = vector.load %arg1[%c0_6, %c0_7, %c0_8] : memref<10x32x32xf32, #tpu.memory_space<vmem>>, vector<1x32x32xf32>
    %6 = vector.shape_cast %5 : vector<1x32x32xf32> to vector<32x32xf32>
    %7 = vector.extract_strided_slice %2 {offsets = [0, 0, 0], sizes = [1, 8, 32], strides = [1, 1, 1]} : vector<10x8x32xf32> to vector<1x8x32xf32>
    %8 = vector.shape_cast %7 : vector<1x8x32xf32> to vector<8x32xf32>
    %9 = math.tanh %3 : vector<8x32xf32>
    %cst = arith.constant dense<0.000000e+00> : vector<8x32xf32>
    %10 = tpu.matmul %9, %6, %cst {dimension_numbers = #tpu.dot_dimension_numbers<[1], [0], [0], [1], [0, 0, 1, 1], [], []>} : vector<8x32xf32>, vector<32x32xf32>, vector<8x32xf32> -> vector<8x32xf32>
    %11 = arith.addf %10, %8 : vector<8x32xf32>
    %cst_9 = arith.constant 5.000000e-01 : f32
    %12 = vector.broadcast %cst_9 : f32 to vector<8x32xf32>
    %13 = arith.mulf %12, %11 : vector<8x32xf32>
    %14 = arith.addf %3, %13 : vector<8x32xf32>
    %15 = math.tanh %14 : vector<8x32xf32>
    %cst_10 = arith.constant dense<0.000000e+00> : vector<8x32xf32>
    %16 = tpu.matmul %15, %6, %cst_10 {dimension_numbers = #tpu.dot_dimension_numbers<[1], [0], [0], [1], [0, 0, 1, 1], [], []>} : vector<8x32xf32>, vector<32x32xf32>, vector<8x32xf32> -> vector<8x32xf32>
    %17 = arith.addf %16, %8 : vector<8x32xf32>
    %cst_11 = arith.constant 1.000000e+00 : f32
    %18 = vector.broadcast %cst_11 : f32 to vector<8x32xf32>
    %19 = arith.mulf %18, %17 : vector<8x32xf32>
    %20 = arith.addf %3, %19 : vector<8x32xf32>
    %c8 = arith.constant 8 : index
    %c0_12 = arith.constant 0 : index
    %21 = vector.load %arg6[%c8, %c0_12] : memref<88x32xf32, #tpu.memory_space<vmem>>, vector<8x32xf32>
    tpu.vector_store %arg6[%c8, %c0_12], %20 {strides = array<i32>} : memref<88x32xf32, #tpu.memory_space<vmem>>, vector<8x32xf32>,
    %c1 = arith.constant 1 : index
    %c0_13 = arith.constant 0 : index
    %c0_14 = arith.constant 0 : index
    %22 = vector.load %arg1[%c1, %c0_13, %c0_14] : memref<10x32x32xf32, #tpu.memory_space<vmem>>, vector<1x32x32xf32>
    %23 = vector.shape_cast %22 : vector<1x32x32xf32> to vector<32x32xf32>
    %24 = vector.extract_strided_slice %2 {offsets = [1, 0, 0], sizes = [1, 8, 32], strides = [1, 1, 1]} : vector<10x8x32xf32> to vector<1x8x32xf32>
    %25 = vector.shape_cast %24 : vector<1x8x32xf32> to vector<8x32xf32>
    %26 = math.tanh %20 : vector<8x32xf32>
    %cst_15 = arith.constant dense<0.000000e+00> : vector<8x32xf32>
    %27 = tpu.matmul %26, %23, %cst_15 {dimension_numbers = #tpu.dot_dimension_numbers<[1], [0], [0], [1], [0, 0, 1, 1], [], []>} : vector<8x32xf32>, vector<32x32xf32>, vector<8x32xf32> -> vector<8x32xf32>
    %28 = arith.addf %27, %25 : vector<8x32xf32>
    %cst_16 = arith.constant 5.000000e-01 : f32
    %29 = vector.broadcast %cst_16 : f32 to vector<8x32xf32>
    %30 = arith.mulf %29, %28 : vector<8x32xf32>
    %31 = arith.addf %20, %30 : vector<8x32xf32>
    %32 = math.tanh %31 : vector<8x32xf32>
    %cst_17 = arith.constant dense<0.000000e+00> : vector<8x32xf32>
    %33 = tpu.matmul %32, %23, %cst_17 {dimension_numbers = #tpu.dot_dimension_numbers<[1], [0], [0], [1], [0, 0, 1, 1], [], []>} : vector<8x32xf32>, vector<32x32xf32>, vector<8x32xf32> -> vector<8x32xf32>
    %34 = arith.addf %33, %25 : vector<8x32xf32>
    %cst_18 = arith.constant 1.000000e+00 : f32
    %35 = vector.broadcast %cst_18 : f32 to vector<8x32xf32>
    %36 = arith.mulf %35, %34 : vector<8x32xf32>
    %37 = arith.addf %20, %36 : vector<8x32xf32>
    %c16 = arith.constant 16 : index
    %c0_19 = arith.constant 0 : index
    %38 = vector.load %arg6[%c16, %c0_19] : memref<88x32xf32, #tpu.memory_space<vmem>>, vector<8x32xf32>
    tpu.vector_store %arg6[%c16, %c0_19], %37 {strides = array<i32>} : memref<88x32xf32, #tpu.memory_space<vmem>>, vector<8x32xf32>,
    %c2 = arith.constant 2 : index
    %c0_20 = arith.constant 0 : index
    %c0_21 = arith.constant 0 : index
    %39 = vector.load %arg1[%c2, %c0_20, %c0_21] : memref<10x32x32xf32, #tpu.memory_space<vmem>>, vector<1x32x32xf32>
    %40 = vector.shape_cast %39 : vector<1x32x32xf32> to vector<32x32xf32>
    %41 = vector.extract_strided_slice %2 {offsets = [2, 0, 0], sizes = [1, 8, 32], strides = [1, 1, 1]} : vector<10x8x32xf32> to vector<1x8x32xf32>
    %42 = vector.shape_cast %41 : vector<1x8x32xf32> to vector<8x32xf32>
    %43 = math.tanh %37 : vector<8x32xf32>
    %cst_22 = arith.constant dense<0.000000e+00> : vector<8x32xf32>
    %44 = tpu.matmul %43, %40, %cst_22 {dimension_numbers = #tpu.dot_dimension_numbers<[1], [0], [0], [1], [0, 0, 1, 1], [], []>} : vector<8x32xf32>, vector<32x32xf32>, vector<8x32xf32> -> vector<8x32xf32>
    %45 = arith.addf %44, %42 : vector<8x32xf32>
    %cst_23 = arith.constant 5.000000e-01 : f32
    %46 = vector.broadcast %cst_23 : f32 to vector<8x32xf32>
    %47 = arith.mulf %46, %45 : vector<8x32xf32>
    %48 = arith.addf %37, %47 : vector<8x32xf32>
    %49 = math.tanh %48 : vector<8x32xf32>
    %cst_24 = arith.constant dense<0.000000e+00> : vector<8x32xf32>
    %50 = tpu.matmul %49, %40, %cst_24 {dimension_numbers = #tpu.dot_dimension_numbers<[1], [0], [0], [1], [0, 0, 1, 1], [], []>} : vector<8x32xf32>, vector<32x32xf32>, vector<8x32xf32> -> vector<8x32xf32>
    %51 = arith.addf %50, %42 : vector<8x32xf32>
    %cst_25 = arith.constant 1.000000e+00 : f32
    %52 = vector.broadcast %cst_25 : f32 to vector<8x32xf32>
    %53 = arith.mulf %52, %51 : vector<8x32xf32>
    %54 = arith.addf %37, %53 : vector<8x32xf32>
    %c24 = arith.constant 24 : index
    %c0_26 = arith.constant 0 : index
    %55 = vector.load %arg6[%c24, %c0_26] : memref<88x32xf32, #tpu.memory_space<vmem>>, vector<8x32xf32>
    tpu.vector_store %arg6[%c24, %c0_26], %54 {strides = array<i32>} : memref<88x32xf32, #tpu.memory_space<vmem>>, vector<8x32xf32>,
    %c3 = arith.constant 3 : index
    %c0_27 = arith.constant 0 : index
    %c0_28 = arith.constant 0 : index
    %56 = vector.load %arg1[%c3, %c0_27, %c0_28] : memref<10x32x32xf32, #tpu.memory_space<vmem>>, vector<1x32x32xf32>
    %57 = vector.shape_cast %56 : vector<1x32x32xf32> to vector<32x32xf32>
    %58 = vector.extract_strided_slice %2 {offsets = [3, 0, 0], sizes = [1, 8, 32], strides = [1, 1, 1]} : vector<10x8x32xf32> to vector<1x8x32xf32>
    %59 = vector.shape_cast %58 : vector<1x8x32xf32> to vector<8x32xf32>
    %60 = math.tanh %54 : vector<8x32xf32>
    %cst_29 = arith.constant dense<0.000000e+00> : vector<8x32xf32>
    %61 = tpu.matmul %60, %57, %cst_29 {dimension_numbers = #tpu.dot_dimension_numbers<[1], [0], [0], [1], [0, 0, 1, 1], [], []>} : vector<8x32xf32>, vector<32x32xf32>, vector<8x32xf32> -> vector<8x32xf32>
    %62 = arith.addf %61, %59 : vector<8x32xf32>
    %cst_30 = arith.constant 5.000000e-01 : f32
    %63 = vector.broadcast %cst_30 : f32 to vector<8x32xf32>
    %64 = arith.mulf %63, %62 : vector<8x32xf32>
    %65 = arith.addf %54, %64 : vector<8x32xf32>
    %66 = math.tanh %65 : vector<8x32xf32>
    %cst_31 = arith.constant dense<0.000000e+00> : vector<8x32xf32>
    %67 = tpu.matmul %66, %57, %cst_31 {dimension_numbers = #tpu.dot_dimension_numbers<[1], [0], [0], [1], [0, 0, 1, 1], [], []>} : vector<8x32xf32>, vector<32x32xf32>, vector<8x32xf32> -> vector<8x32xf32>
    %68 = arith.addf %67, %59 : vector<8x32xf32>
    %cst_32 = arith.constant 1.000000e+00 : f32
    %69 = vector.broadcast %cst_32 : f32 to vector<8x32xf32>
    %70 = arith.mulf %69, %68 : vector<8x32xf32>
    %71 = arith.addf %54, %70 : vector<8x32xf32>
    %c32 = arith.constant 32 : index
    %c0_33 = arith.constant 0 : index
    %72 = vector.load %arg6[%c32, %c0_33] : memref<88x32xf32, #tpu.memory_space<vmem>>, vector<8x32xf32>
    tpu.vector_store %arg6[%c32, %c0_33], %71 {strides = array<i32>} : memref<88x32xf32, #tpu.memory_space<vmem>>, vector<8x32xf32>,
    %c4 = arith.constant 4 : index
    %c0_34 = arith.constant 0 : index
    %c0_35 = arith.constant 0 : index
    %73 = vector.load %arg1[%c4, %c0_34, %c0_35] : memref<10x32x32xf32, #tpu.memory_space<vmem>>, vector<1x32x32xf32>
    %74 = vector.shape_cast %73 : vector<1x32x32xf32> to vector<32x32xf32>
    %75 = vector.extract_strided_slice %2 {offsets = [4, 0, 0], sizes = [1, 8, 32], strides = [1, 1, 1]} : vector<10x8x32xf32> to vector<1x8x32xf32>
    %76 = vector.shape_cast %75 : vector<1x8x32xf32> to vector<8x32xf32>
    %77 = math.tanh %71 : vector<8x32xf32>
    %cst_36 = arith.constant dense<0.000000e+00> : vector<8x32xf32>
    %78 = tpu.matmul %77, %74, %cst_36 {dimension_numbers = #tpu.dot_dimension_numbers<[1], [0], [0], [1], [0, 0, 1, 1], [], []>} : vector<8x32xf32>, vector<32x32xf32>, vector<8x32xf32> -> vector<8x32xf32>
    %79 = arith.addf %78, %76 : vector<8x32xf32>
    %cst_37 = arith.constant 5.000000e-01 : f32
    %80 = vector.broadcast %cst_37 : f32 to vector<8x32xf32>
    %81 = arith.mulf %80, %79 : vector<8x32xf32>
    %82 = arith.addf %71, %81 : vector<8x32xf32>
    %83 = math.tanh %82 : vector<8x32xf32>
    %cst_38 = arith.constant dense<0.000000e+00> : vector<8x32xf32>
    %84 = tpu.matmul %83, %74, %cst_38 {dimension_numbers = #tpu.dot_dimension_numbers<[1], [0], [0], [1], [0, 0, 1, 1], [], []>} : vector<8x32xf32>, vector<32x32xf32>, vector<8x32xf32> -> vector<8x32xf32>
    %85 = arith.addf %84, %76 : vector<8x32xf32>
    %cst_39 = arith.constant 1.000000e+00 : f32
    %86 = vector.broadcast %cst_39 : f32 to vector<8x32xf32>
    %87 = arith.mulf %86, %85 : vector<8x32xf32>
    %88 = arith.addf %71, %87 : vector<8x32xf32>
    %c40 = arith.constant 40 : index
    %c0_40 = arith.constant 0 : index
    %89 = vector.load %arg6[%c40, %c0_40] : memref<88x32xf32, #tpu.memory_space<vmem>>, vector<8x32xf32>
    tpu.vector_store %arg6[%c40, %c0_40], %88 {strides = array<i32>} : memref<88x32xf32, #tpu.memory_space<vmem>>, vector<8x32xf32>,
    %c5 = arith.constant 5 : index
    %c0_41 = arith.constant 0 : index
    %c0_42 = arith.constant 0 : index
    %90 = vector.load %arg1[%c5, %c0_41, %c0_42] : memref<10x32x32xf32, #tpu.memory_space<vmem>>, vector<1x32x32xf32>
    %91 = vector.shape_cast %90 : vector<1x32x32xf32> to vector<32x32xf32>
    %92 = vector.extract_strided_slice %2 {offsets = [5, 0, 0], sizes = [1, 8, 32], strides = [1, 1, 1]} : vector<10x8x32xf32> to vector<1x8x32xf32>
    %93 = vector.shape_cast %92 : vector<1x8x32xf32> to vector<8x32xf32>
    %94 = math.tanh %88 : vector<8x32xf32>
    %cst_43 = arith.constant dense<0.000000e+00> : vector<8x32xf32>
    %95 = tpu.matmul %94, %91, %cst_43 {dimension_numbers = #tpu.dot_dimension_numbers<[1], [0], [0], [1], [0, 0, 1, 1], [], []>} : vector<8x32xf32>, vector<32x32xf32>, vector<8x32xf32> -> vector<8x32xf32>
    %96 = arith.addf %95, %93 : vector<8x32xf32>
    %cst_44 = arith.constant 5.000000e-01 : f32
    %97 = vector.broadcast %cst_44 : f32 to vector<8x32xf32>
    %98 = arith.mulf %97, %96 : vector<8x32xf32>
    %99 = arith.addf %88, %98 : vector<8x32xf32>
    %100 = math.tanh %99 : vector<8x32xf32>
    %cst_45 = arith.constant dense<0.000000e+00> : vector<8x32xf32>
    %101 = tpu.matmul %100, %91, %cst_45 {dimension_numbers = #tpu.dot_dimension_numbers<[1], [0], [0], [1], [0, 0, 1, 1], [], []>} : vector<8x32xf32>, vector<32x32xf32>, vector<8x32xf32> -> vector<8x32xf32>
    %102 = arith.addf %101, %93 : vector<8x32xf32>
    %cst_46 = arith.constant 1.000000e+00 : f32
    %103 = vector.broadcast %cst_46 : f32 to vector<8x32xf32>
    %104 = arith.mulf %103, %102 : vector<8x32xf32>
    %105 = arith.addf %88, %104 : vector<8x32xf32>
    %c48 = arith.constant 48 : index
    %c0_47 = arith.constant 0 : index
    %106 = vector.load %arg6[%c48, %c0_47] : memref<88x32xf32, #tpu.memory_space<vmem>>, vector<8x32xf32>
    tpu.vector_store %arg6[%c48, %c0_47], %105 {strides = array<i32>} : memref<88x32xf32, #tpu.memory_space<vmem>>, vector<8x32xf32>,
    %c6 = arith.constant 6 : index
    %c0_48 = arith.constant 0 : index
    %c0_49 = arith.constant 0 : index
    %107 = vector.load %arg1[%c6, %c0_48, %c0_49] : memref<10x32x32xf32, #tpu.memory_space<vmem>>, vector<1x32x32xf32>
    %108 = vector.shape_cast %107 : vector<1x32x32xf32> to vector<32x32xf32>
    %109 = vector.extract_strided_slice %2 {offsets = [6, 0, 0], sizes = [1, 8, 32], strides = [1, 1, 1]} : vector<10x8x32xf32> to vector<1x8x32xf32>
    %110 = vector.shape_cast %109 : vector<1x8x32xf32> to vector<8x32xf32>
    %111 = math.tanh %105 : vector<8x32xf32>
    %cst_50 = arith.constant dense<0.000000e+00> : vector<8x32xf32>
    %112 = tpu.matmul %111, %108, %cst_50 {dimension_numbers = #tpu.dot_dimension_numbers<[1], [0], [0], [1], [0, 0, 1, 1], [], []>} : vector<8x32xf32>, vector<32x32xf32>, vector<8x32xf32> -> vector<8x32xf32>
    %113 = arith.addf %112, %110 : vector<8x32xf32>
    %cst_51 = arith.constant 5.000000e-01 : f32
    %114 = vector.broadcast %cst_51 : f32 to vector<8x32xf32>
    %115 = arith.mulf %114, %113 : vector<8x32xf32>
    %116 = arith.addf %105, %115 : vector<8x32xf32>
    %117 = math.tanh %116 : vector<8x32xf32>
    %cst_52 = arith.constant dense<0.000000e+00> : vector<8x32xf32>
    %118 = tpu.matmul %117, %108, %cst_52 {dimension_numbers = #tpu.dot_dimension_numbers<[1], [0], [0], [1], [0, 0, 1, 1], [], []>} : vector<8x32xf32>, vector<32x32xf32>, vector<8x32xf32> -> vector<8x32xf32>
    %119 = arith.addf %118, %110 : vector<8x32xf32>
    %cst_53 = arith.constant 1.000000e+00 : f32
    %120 = vector.broadcast %cst_53 : f32 to vector<8x32xf32>
    %121 = arith.mulf %120, %119 : vector<8x32xf32>
    %122 = arith.addf %105, %121 : vector<8x32xf32>
    %c56 = arith.constant 56 : index
    %c0_54 = arith.constant 0 : index
    %123 = vector.load %arg6[%c56, %c0_54] : memref<88x32xf32, #tpu.memory_space<vmem>>, vector<8x32xf32>
    tpu.vector_store %arg6[%c56, %c0_54], %122 {strides = array<i32>} : memref<88x32xf32, #tpu.memory_space<vmem>>, vector<8x32xf32>,
    %c7 = arith.constant 7 : index
    %c0_55 = arith.constant 0 : index
    %c0_56 = arith.constant 0 : index
    %124 = vector.load %arg1[%c7, %c0_55, %c0_56] : memref<10x32x32xf32, #tpu.memory_space<vmem>>, vector<1x32x32xf32>
    %125 = vector.shape_cast %124 : vector<1x32x32xf32> to vector<32x32xf32>
    %126 = vector.extract_strided_slice %2 {offsets = [7, 0, 0], sizes = [1, 8, 32], strides = [1, 1, 1]} : vector<10x8x32xf32> to vector<1x8x32xf32>
    %127 = vector.shape_cast %126 : vector<1x8x32xf32> to vector<8x32xf32>
    %128 = math.tanh %122 : vector<8x32xf32>
    %cst_57 = arith.constant dense<0.000000e+00> : vector<8x32xf32>
    %129 = tpu.matmul %128, %125, %cst_57 {dimension_numbers = #tpu.dot_dimension_numbers<[1], [0], [0], [1], [0, 0, 1, 1], [], []>} : vector<8x32xf32>, vector<32x32xf32>, vector<8x32xf32> -> vector<8x32xf32>
    %130 = arith.addf %129, %127 : vector<8x32xf32>
    %cst_58 = arith.constant 5.000000e-01 : f32
    %131 = vector.broadcast %cst_58 : f32 to vector<8x32xf32>
    %132 = arith.mulf %131, %130 : vector<8x32xf32>
    %133 = arith.addf %122, %132 : vector<8x32xf32>
    %134 = math.tanh %133 : vector<8x32xf32>
    %cst_59 = arith.constant dense<0.000000e+00> : vector<8x32xf32>
    %135 = tpu.matmul %134, %125, %cst_59 {dimension_numbers = #tpu.dot_dimension_numbers<[1], [0], [0], [1], [0, 0, 1, 1], [], []>} : vector<8x32xf32>, vector<32x32xf32>, vector<8x32xf32> -> vector<8x32xf32>
    %136 = arith.addf %135, %127 : vector<8x32xf32>
    %cst_60 = arith.constant 1.000000e+00 : f32
    %137 = vector.broadcast %cst_60 : f32 to vector<8x32xf32>
    %138 = arith.mulf %137, %136 : vector<8x32xf32>
    %139 = arith.addf %122, %138 : vector<8x32xf32>
    %c64 = arith.constant 64 : index
    %c0_61 = arith.constant 0 : index
    %140 = vector.load %arg6[%c64, %c0_61] : memref<88x32xf32, #tpu.memory_space<vmem>>, vector<8x32xf32>
    tpu.vector_store %arg6[%c64, %c0_61], %139 {strides = array<i32>} : memref<88x32xf32, #tpu.memory_space<vmem>>, vector<8x32xf32>,
    %c8_62 = arith.constant 8 : index
    %c0_63 = arith.constant 0 : index
    %c0_64 = arith.constant 0 : index
    %141 = vector.load %arg1[%c8_62, %c0_63, %c0_64] : memref<10x32x32xf32, #tpu.memory_space<vmem>>, vector<1x32x32xf32>
    %142 = vector.shape_cast %141 : vector<1x32x32xf32> to vector<32x32xf32>
    %143 = vector.extract_strided_slice %2 {offsets = [8, 0, 0], sizes = [1, 8, 32], strides = [1, 1, 1]} : vector<10x8x32xf32> to vector<1x8x32xf32>
    %144 = vector.shape_cast %143 : vector<1x8x32xf32> to vector<8x32xf32>
    %145 = math.tanh %139 : vector<8x32xf32>
    %cst_65 = arith.constant dense<0.000000e+00> : vector<8x32xf32>
    %146 = tpu.matmul %145, %142, %cst_65 {dimension_numbers = #tpu.dot_dimension_numbers<[1], [0], [0], [1], [0, 0, 1, 1], [], []>} : vector<8x32xf32>, vector<32x32xf32>, vector<8x32xf32> -> vector<8x32xf32>
    %147 = arith.addf %146, %144 : vector<8x32xf32>
    %cst_66 = arith.constant 5.000000e-01 : f32
    %148 = vector.broadcast %cst_66 : f32 to vector<8x32xf32>
    %149 = arith.mulf %148, %147 : vector<8x32xf32>
    %150 = arith.addf %139, %149 : vector<8x32xf32>
    %151 = math.tanh %150 : vector<8x32xf32>
    %cst_67 = arith.constant dense<0.000000e+00> : vector<8x32xf32>
    %152 = tpu.matmul %151, %142, %cst_67 {dimension_numbers = #tpu.dot_dimension_numbers<[1], [0], [0], [1], [0, 0, 1, 1], [], []>} : vector<8x32xf32>, vector<32x32xf32>, vector<8x32xf32> -> vector<8x32xf32>
    %153 = arith.addf %152, %144 : vector<8x32xf32>
    %cst_68 = arith.constant 1.000000e+00 : f32
    %154 = vector.broadcast %cst_68 : f32 to vector<8x32xf32>
    %155 = arith.mulf %154, %153 : vector<8x32xf32>
    %156 = arith.addf %139, %155 : vector<8x32xf32>
    %c72 = arith.constant 72 : index
    %c0_69 = arith.constant 0 : index
    %157 = vector.load %arg6[%c72, %c0_69] : memref<88x32xf32, #tpu.memory_space<vmem>>, vector<8x32xf32>
    tpu.vector_store %arg6[%c72, %c0_69], %156 {strides = array<i32>} : memref<88x32xf32, #tpu.memory_space<vmem>>, vector<8x32xf32>,
    %c9 = arith.constant 9 : index
    %c0_70 = arith.constant 0 : index
    %c0_71 = arith.constant 0 : index
    %158 = vector.load %arg1[%c9, %c0_70, %c0_71] : memref<10x32x32xf32, #tpu.memory_space<vmem>>, vector<1x32x32xf32>
    %159 = vector.shape_cast %158 : vector<1x32x32xf32> to vector<32x32xf32>
    %160 = vector.extract_strided_slice %2 {offsets = [9, 0, 0], sizes = [1, 8, 32], strides = [1, 1, 1]} : vector<10x8x32xf32> to vector<1x8x32xf32>
    %161 = vector.shape_cast %160 : vector<1x8x32xf32> to vector<8x32xf32>
    %162 = math.tanh %156 : vector<8x32xf32>
    %cst_72 = arith.constant dense<0.000000e+00> : vector<8x32xf32>
    %163 = tpu.matmul %162, %159, %cst_72 {dimension_numbers = #tpu.dot_dimension_numbers<[1], [0], [0], [1], [0, 0, 1, 1], [], []>} : vector<8x32xf32>, vector<32x32xf32>, vector<8x32xf32> -> vector<8x32xf32>
    %164 = arith.addf %163, %161 : vector<8x32xf32>
    %cst_73 = arith.constant 5.000000e-01 : f32
    %165 = vector.broadcast %cst_73 : f32 to vector<8x32xf32>
    %166 = arith.mulf %165, %164 : vector<8x32xf32>
    %167 = arith.addf %156, %166 : vector<8x32xf32>
    %168 = math.tanh %167 : vector<8x32xf32>
    %cst_74 = arith.constant dense<0.000000e+00> : vector<8x32xf32>
    %169 = tpu.matmul %168, %159, %cst_74 {dimension_numbers = #tpu.dot_dimension_numbers<[1], [0], [0], [1], [0, 0, 1, 1], [], []>} : vector<8x32xf32>, vector<32x32xf32>, vector<8x32xf32> -> vector<8x32xf32>
    %170 = arith.addf %169, %161 : vector<8x32xf32>
    %cst_75 = arith.constant 1.000000e+00 : f32
    %171 = vector.broadcast %cst_75 : f32 to vector<8x32xf32>
    %172 = arith.mulf %171, %170 : vector<8x32xf32>
    %173 = arith.addf %156, %172 : vector<8x32xf32>
    %c80 = arith.constant 80 : index
    %c0_76 = arith.constant 0 : index
    %174 = vector.load %arg6[%c80, %c0_76] : memref<88x32xf32, #tpu.memory_space<vmem>>, vector<8x32xf32>
    tpu.vector_store %arg6[%c80, %c0_76], %173 {strides = array<i32>} : memref<88x32xf32, #tpu.memory_space<vmem>>, vector<8x32xf32>,
    %c0_77 = arith.constant 0 : index
    %c0_78 = arith.constant 0 : index
    %175 = vector.load %arg6[%c0_77, %c0_78] : memref<88x32xf32, #tpu.memory_space<vmem>>, vector<88x32xf32>
    %c0_79 = arith.constant 0 : index
    %c0_80 = arith.constant 0 : index
    %176 = vector.load %arg3[%c0_79, %c0_80] : memref<32x128xf32, #tpu.memory_space<vmem>>, vector<32x128xf32>
    %cst_81 = arith.constant dense<0.000000e+00> : vector<88x128xf32>
    %177 = tpu.matmul %175, %176, %cst_81 {dimension_numbers = #tpu.dot_dimension_numbers<[1], [0], [0], [1], [0, 0, 1, 1], [], []>} : vector<88x32xf32>, vector<32x128xf32>, vector<88x128xf32> -> vector<88x128xf32>
    %c0_82 = arith.constant 0 : index
    %c0_83 = arith.constant 0 : index
    %178 = vector.load %arg4[%c0_82, %c0_83] : memref<1x128xf32, #tpu.memory_space<vmem>>, vector<1x128xf32>
    %179 = vector.broadcast %178 : vector<1x128xf32> to vector<88x128xf32>
    %180 = arith.addf %177, %179 : vector<88x128xf32>
    %181 = vector.extract_strided_slice %180 {offsets = [0, 0], sizes = [8, 128], strides = [1, 1]} : vector<88x128xf32> to vector<8x128xf32>
    %182 = vector.extract_strided_slice %180 {offsets = [8, 0], sizes = [8, 128], strides = [1, 1]} : vector<88x128xf32> to vector<8x128xf32>
    %183 = vector.extract_strided_slice %180 {offsets = [16, 0], sizes = [8, 128], strides = [1, 1]} : vector<88x128xf32> to vector<8x128xf32>
    %184 = arith.subf %183, %182 : vector<8x128xf32>
    %cst_84 = arith.constant 0.111111112 : f32
    %185 = vector.broadcast %cst_84 : f32 to vector<8x128xf32>
    %186 = arith.mulf %185, %184 : vector<8x128xf32>
    %187 = arith.addf %182, %186 : vector<8x128xf32>
    %188 = vector.extract_strided_slice %180 {offsets = [16, 0], sizes = [8, 128], strides = [1, 1]} : vector<88x128xf32> to vector<8x128xf32>
    %189 = vector.extract_strided_slice %180 {offsets = [24, 0], sizes = [8, 128], strides = [1, 1]} : vector<88x128xf32> to vector<8x128xf32>
    %190 = arith.subf %189, %188 : vector<8x128xf32>
    %cst_85 = arith.constant 0.222222224 : f32
    %191 = vector.broadcast %cst_85 : f32 to vector<8x128xf32>
    %192 = arith.mulf %191, %190 : vector<8x128xf32>
    %193 = arith.addf %188, %192 : vector<8x128xf32>
    %194 = vector.extract_strided_slice %180 {offsets = [24, 0], sizes = [8, 128], strides = [1, 1]} : vector<88x128xf32> to vector<8x128xf32>
    %195 = vector.extract_strided_slice %180 {offsets = [32, 0], sizes = [8, 128], strides = [1, 1]} : vector<88x128xf32> to vector<8x128xf32>
    %196 = arith.subf %195, %194 : vector<8x128xf32>
    %cst_86 = arith.constant 0.333333343 : f32
    %197 = vector.broadcast %cst_86 : f32 to vector<8x128xf32>
    %198 = arith.mulf %197, %196 : vector<8x128xf32>
    %199 = arith.addf %194, %198 : vector<8x128xf32>
    %200 = vector.extract_strided_slice %180 {offsets = [32, 0], sizes = [8, 128], strides = [1, 1]} : vector<88x128xf32> to vector<8x128xf32>
    %201 = vector.extract_strided_slice %180 {offsets = [40, 0], sizes = [8, 128], strides = [1, 1]} : vector<88x128xf32> to vector<8x128xf32>
    %202 = arith.subf %201, %200 : vector<8x128xf32>
    %cst_87 = arith.constant 0.444444448 : f32
    %203 = vector.broadcast %cst_87 : f32 to vector<8x128xf32>
    %204 = arith.mulf %203, %202 : vector<8x128xf32>
    %205 = arith.addf %200, %204 : vector<8x128xf32>
    %206 = vector.extract_strided_slice %180 {offsets = [40, 0], sizes = [8, 128], strides = [1, 1]} : vector<88x128xf32> to vector<8x128xf32>
    %207 = vector.extract_strided_slice %180 {offsets = [48, 0], sizes = [8, 128], strides = [1, 1]} : vector<88x128xf32> to vector<8x128xf32>
    %208 = arith.subf %207, %206 : vector<8x128xf32>
    %cst_88 = arith.constant 0.555555582 : f32
    %209 = vector.broadcast %cst_88 : f32 to vector<8x128xf32>
    %210 = arith.mulf %209, %208 : vector<8x128xf32>
    %211 = arith.addf %206, %210 : vector<8x128xf32>
    %212 = vector.extract_strided_slice %180 {offsets = [48, 0], sizes = [8, 128], strides = [1, 1]} : vector<88x128xf32> to vector<8x128xf32>
    %213 = vector.extract_strided_slice %180 {offsets = [56, 0], sizes = [8, 128], strides = [1, 1]} : vector<88x128xf32> to vector<8x128xf32>
    %214 = arith.subf %213, %212 : vector<8x128xf32>
    %cst_89 = arith.constant 0.666666686 : f32
    %215 = vector.broadcast %cst_89 : f32 to vector<8x128xf32>
    %216 = arith.mulf %215, %214 : vector<8x128xf32>
    %217 = arith.addf %212, %216 : vector<8x128xf32>
    %218 = vector.extract_strided_slice %180 {offsets = [56, 0], sizes = [8, 128], strides = [1, 1]} : vector<88x128xf32> to vector<8x128xf32>
    %219 = vector.extract_strided_slice %180 {offsets = [64, 0], sizes = [8, 128], strides = [1, 1]} : vector<88x128xf32> to vector<8x128xf32>
    %220 = arith.subf %219, %218 : vector<8x128xf32>
    %cst_90 = arith.constant 0.777777791 : f32
    %221 = vector.broadcast %cst_90 : f32 to vector<8x128xf32>
    %222 = arith.mulf %221, %220 : vector<8x128xf32>
    %223 = arith.addf %218, %222 : vector<8x128xf32>
    %224 = vector.extract_strided_slice %180 {offsets = [64, 0], sizes = [8, 128], strides = [1, 1]} : vector<88x128xf32> to vector<8x128xf32>
    %225 = vector.extract_strided_slice %180 {offsets = [72, 0], sizes = [8, 128], strides = [1, 1]} : vector<88x128xf32> to vector<8x128xf32>
    %226 = arith.subf %225, %224 : vector<8x128xf32>
    %cst_91 = arith.constant 0.888888895 : f32
    %227 = vector.broadcast %cst_91 : f32 to vector<8x128xf32>
    %228 = arith.mulf %227, %226 : vector<8x128xf32>
    %229 = arith.addf %224, %228 : vector<8x128xf32>
    %230 = vector.extract_strided_slice %180 {offsets = [80, 0], sizes = [8, 128], strides = [1, 1]} : vector<88x128xf32> to vector<8x128xf32>
    %231 = vector.shape_cast %181 : vector<8x128xf32> to vector<1x8x128xf32>
    %232 = vector.shape_cast %187 : vector<8x128xf32> to vector<1x8x128xf32>
    %233 = vector.shape_cast %193 : vector<8x128xf32> to vector<1x8x128xf32>
    %234 = vector.shape_cast %199 : vector<8x128xf32> to vector<1x8x128xf32>
    %235 = vector.shape_cast %205 : vector<8x128xf32> to vector<1x8x128xf32>
    %236 = vector.shape_cast %211 : vector<8x128xf32> to vector<1x8x128xf32>
    %237 = vector.shape_cast %217 : vector<8x128xf32> to vector<1x8x128xf32>
    %238 = vector.shape_cast %223 : vector<8x128xf32> to vector<1x8x128xf32>
    %239 = vector.shape_cast %229 : vector<8x128xf32> to vector<1x8x128xf32>
    %240 = vector.shape_cast %230 : vector<8x128xf32> to vector<1x8x128xf32>
    %241 = tpu.concatenate %231, %232, %233, %234, %235, %236, %237, %238, %239, %240 in 0 : vector<1x8x128xf32>, vector<1x8x128xf32>, vector<1x8x128xf32>, vector<1x8x128xf32>, vector<1x8x128xf32>, vector<1x8x128xf32>, vector<1x8x128xf32>, vector<1x8x128xf32>, vector<1x8x128xf32>, vector<1x8x128xf32> -> vector<10x8x128xf32>
    %c0_92 = arith.constant 0 : index
    %c0_93 = arith.constant 0 : index
    %c0_94 = arith.constant 0 : index
    %242 = vector.load %arg5[%c0_92, %c0_93, %c0_94] : memref<10x8x128xf32, #tpu.memory_space<vmem>>, vector<10x8x128xf32>
    tpu.vector_store %arg5[%c0_92, %c0_93, %c0_94], %241 {strides = array<i32>} : memref<10x8x128xf32, #tpu.memory_space<vmem>>, vector<10x8x128xf32>,
    return
  }
}

</mosaic_0001>

<bundles_post_ra>
// kernel: neural_ode_forward.1
= control target key start
LH: loop header
LB: loop body
LE: loop exit
PB: predicated region body
PF: predicated region fallthrough
CT: control target
= control target key end

     0   :  { %10 = vsyncpa [#allocation4], 0  ;;  %s2826_s0 = inlined_call_operand.hbm [shape: f32[8,32], index: 0, kind: input, shape index: {}]   ;;  %s2827_s1 = inlined_call_operand.hbm [shape: f32[10,32,32], index: 1, kind: input, shape index: {}]   ;;  %s2828_s2 = inlined_call_operand.hbm [shape: f32[10,1,32], index: 2, kind: input, shape index: {}]   ;;  %s2829_s3 = inlined_call_operand.hbm [shape: f32[32,128], index: 3, kind: input, shape index: {}]   ;;  %s2830_s4 = inlined_call_operand.hbm [shape: f32[1,128], index: 4, kind: input, shape index: {}]   ;;  %s2831_s5 = inlined_call_operand.vmem [shape: f32[10,8,128], index: 5, kind: output, shape index: {}]  }
   0x1   :  { %11 = vsyncpa [#allocation6], 0 }
   0x2   :  { %12 = vsyncpa [#allocation9], 0  ;;  %s2525_s18 = smov [#allocation5]  }
   0x3   :  { %s28_s19 = sshll.u32 %s2525_s18, 4  ;;  %s29_s19 = int_to_ptr.vmem [resolvable:$true] %s28_s19 }
   0x4   :  { %s2427_s20 = scalar_lea.vmem %s29_s19, 5120  ;;  %p2432_p1 = scmp.lt.s32.totalorder %s29_s19, %s29_s19 }
   0x5   :  { %p2428_p0 = scmp.ne.s32.totalorder %s29_s19, %s2427_s20  ;;  %p2433_p2 = scmp.lt.s32.totalorder %s2427_s20, %s2427_s20 }
   0x7   :  { %p2434_p3 = por %p2433_p2, %p2432_p1 }
   0x9   :  { %p2435_p4 = pnand %p2434_p3, %p2428_p0 }
   0xb   :  { %2438 = shalt.err (!%p2435_p4)
}
   0xc   :  { %s2526_s21 = smov 128   ;;  %s2527_s22 = smov 8  }
   0xd   :  { %34 = dma.hbm_to_vmem [thread:$0]  %s2827_s1, 5120, %s29_s19, [#allocation6], %s2526_s21, %s2526_s21, %s2527_s22  }
   0xe   :  { %s2528_s25 = smov [#allocation8]   ;;  %s2529_s27 = smov [#allocation3]  }
   0xf   :  { %s52_s26 = sshll.u32 %s2528_s25, 4  ;;  %s19_s28 = sshll.u32 %s2529_s27, 4  ;;  %s53_s26 = int_to_ptr.vmem [resolvable:$true] %s52_s26  ;;  %s20_s28 = int_to_ptr.vmem [resolvable:$true] %s19_s28 }
  0x10   :  { %s2447_s29 = scalar_lea.vmem %s53_s26, 512  ;;  %p2452_p6 = scmp.lt.s32.totalorder %s53_s26, %s53_s26 }
  0x11   :  { %p2448_p5 = scmp.ne.s32.totalorder %s53_s26, %s2447_s29  ;;  %p2453_p7 = scmp.lt.s32.totalorder %s2447_s29, %s2447_s29 }
  0x13   :  { %p2454_p8 = por %p2453_p7, %p2452_p6 }
  0x15   :  { %p2455_p9 = pnand %p2454_p8, %p2448_p5 }
  0x17   :  { %2458 = shalt.err (!%p2455_p9)
}
  0x18   :  { %58 = dma.hbm_to_vmem [thread:$0]  %s2829_s3, 512, %s53_s26, [#allocation9], %s2526_s21, %s2526_s21, %s2527_s22  }
  0x19   :  { %s2467_s7 = scalar_lea.vmem %s20_s28, 128  ;;  %p2472_p11 = scmp.lt.s32.totalorder %s20_s28, %s20_s28 }
  0x1a   :  { %p2468_p10 = scmp.ne.s32.totalorder %s20_s28, %s2467_s7  ;;  %p2473_p12 = scmp.lt.s32.totalorder %s2467_s7, %s2467_s7 }
  0x1c   :  { %p2474_p13 = por %p2473_p12, %p2472_p11 }
  0x1e   :  { %p2475_p0 = pnand %p2474_p13, %p2468_p10 }
  0x20   :  { %2478 = shalt.err (!%p2475_p0)
}
  0x21   :  { %22 = dma.hbm_to_vmem [thread:$0]  %s2826_s0, 128, %s20_s28, [#allocation4]  }
  0x22   :  { %s2530_s9 = smov [#allocation7]  }
  0x23   :  { %s40_s10 = sshll.u32 %s2530_s9, 4  ;;  %s41_s10 = int_to_ptr.vmem [resolvable:$true] %s40_s10 }
  0x24   :  { %s2487_s11 = scalar_lea.vmem %s41_s10, 160  ;;  %p2492_p2 = scmp.lt.s32.totalorder %s41_s10, %s41_s10 }
  0x25   :  { %p2488_p1 = scmp.ne.s32.totalorder %s41_s10, %s2487_s11  ;;  %p2493_p3 = scmp.lt.s32.totalorder %s2487_s11, %s2487_s11 }
  0x27   :  { %p2494_p4 = por %p2493_p3, %p2492_p2 }
  0x29   :  { %p2495_p5 = pnand %p2494_p4, %p2488_p1 }
  0x2b   :  { %2498 = shalt.err (!%p2495_p5)
}
  0x2c   :  { %s2531_s3 = smov 16   ;;  %s2532_s12 = smov 1  }
  0x2d   :  { %46 = dma.hbm_to_vmem [thread:$0]  %s2828_s2, 160, %s41_s10, [#allocation6], %s2531_s3, %s2531_s3, %s2532_s12  }
  0x2e   :  { %s2533_s15 = smov [#allocation10]  }
  0x2f   :  { %s65_s16 = sshll.u32 %s2533_s15, 4  ;;  %s66_s16 = int_to_ptr.vmem [resolvable:$true] %s65_s16 }
  0x30   :  { %s2507_s0 = scalar_lea.vmem %s66_s16, 16  ;;  %s2511_s17 = scalar_lea.vmem %s66_s16, 32 }
  0x31   :  { %p2508_p6 = scmp.ne.s32.totalorder %s66_s16, %s2507_s0  ;;  %p2512_p7 = scmp.lt.s32.totalorder %s66_s16, %s66_s16 }
  0x32   :  { %p2513_p8 = scmp.lt.s32.totalorder %s2511_s17, %s2507_s0 }
  0x34   :  { %p2514_p9 = por %p2513_p8, %p2512_p7 }
  0x36   :  { %p2515_p10 = pnand %p2514_p9, %p2508_p6 }
  0x38   :  { %2518 = shalt.err (!%p2515_p10)
}
  0x39   :  { %68 = dma.hbm_to_vmem [thread:$0]  %s2830_s4, 16, %s66_s16, [#allocation9]  }
  0x3a   :  { %2519 = dma.done.wait [#allocation4], 128  }
  0x3b   :  { %2520 = vsyncadd [#allocation4], 4294967168 }
  0x3c   :  { %2521 = dma.done.wait [#allocation6], 5280  }
  0x3d   :  { %2522 = vsyncadd [#allocation6], 4294962016 }
  0x3e   :  { %2523 = dma.done.wait [#allocation9], 528  }
  0x3f   :  { %2524 = vsyncadd [#allocation9], 4294966768  ;;  %v2534_v0 = vmov 0.0   ;;  %vm2535_vm0 = vmmov 0   ;;  %v100_v1 = vld [vmem:[#allocation5 + $0x18] sm:$0xff]  ;;  %v99_v2 = vld [vmem:[#allocation5 + $0x10] sm:$0xff] }
  0x40   :  { %2099 = vmatprep.subr.mxu0 %v2534_v0  ;;  %2107 = vmatprep.mubr.msk.f32.mxu0 %vm2535_vm0, %v2534_v0  ;;  %v94_v3 = vld [vmem:[#allocation3] sm:$0xff]  ;;  %vm95_vm1 = vcmask 261120   ;;  %v98_v4 = vld [vmem:[#allocation5 + $0x8] sm:$0xff]  ;;  %v97_v5 = vld [vmem:[#allocation5] sm:$0xff] }
  0x41   :  { %2110 = vmatprep.subr.mxu1 %v2534_v0  ;;  %2118 = vmatprep.mubr.msk.f32.mxu1 %vm2535_vm0, %v2534_v0  ;;  %2379 = vtanh.f32 %v94_v3  ;;  %96 = vst.msk [vmem:[#allocation2] sm:$0xff] %vm95_vm1, %v94_v3  ;;  %v1942_v7 = vld [vmem:[#allocation7] ss:$0 sm:$0xff]  ;;  %v263_v14 = vld [vmem:[#allocation5 + $0x38] sm:$0xff]  ;;  %v262_v15 = vld [vmem:[#allocation5 + $0x30] sm:$0xff] }
  0x42   :  { %2100 = vmatpush3.msra.mxu0 %v100_v1  ;;  %2111 = vmatpush3.msra.mxu1 %v100_v1  ;;  %v261_v16 = vld [vmem:[#allocation5 + $0x28] sm:$0xff]  ;;  %v260_v17 = vld [vmem:[#allocation5 + $0x20] sm:$0xff]  ;;  %v426_v30 = vld [vmem:[#allocation5 + $0x58] sm:$0xff] }
  0x43   :  { %2101 = vmatprep.subr.mxu0 %v2534_v0  ;;  %2112 = vmatprep.subr.mxu1 %v2534_v0  ;;  %v1945_v23 = vld [vmem:[#allocation7 + $0x1] ss:$0 sm:$0xff]  ;;  %v425_v31 = vld [vmem:[#allocation5 + $0x50] sm:$0xff]  ;;  %v424_v32 = vld [vmem:[#allocation5 + $0x48] sm:$0xff] }
  0x44   :  { %2102 = vmatpush3.msra.mxu0 %v99_v2  ;;  %2113 = vmatpush3.msra.mxu1 %v99_v2  ;;  %v423_v33 = vld [vmem:[#allocation5 + $0x40] sm:$0xff]  ;;  %v589_v46 = vld [vmem:[#allocation5 + $0x78] sm:$0xff]  ;;  %v588_v47 = vld [vmem:[#allocation5 + $0x70] sm:$0xff] }
  0x45   :  { %2103 = vmatprep.subr.mxu0 %v2534_v0  ;;  %2114 = vmatprep.subr.mxu1 %v2534_v0  ;;  %v1948_v39 = vld [vmem:[#allocation7 + $0x2] ss:$0 sm:$0xff]  ;;  %v587_v48 = vld [vmem:[#allocation5 + $0x68] sm:$0xff]  ;;  %v1951_v55 = vld [vmem:[#allocation7 + $0x3] ss:$0 sm:$0xff] }
  0x46   :  { %2104 = vmatpush3.msra.mxu0 %v98_v4  ;;  %2115 = vmatpush3.msra.mxu1 %v98_v4  ;;  %v586_v49 = vld [vmem:[#allocation5 + $0x60] sm:$0xff]  ;;  %v752_v62 = vld [vmem:[#allocation5 + $0x98] sm:$0xff]  ;;  %v751_v63 = vld [vmem:[#allocation5 + $0x90] sm:$0xff] }
  0x47   :  { %2105 = vmatprep.subr.mxu0 %v2534_v0  ;;  %2116 = vmatprep.subr.mxu1 %v2534_v0  ;;  %v750_v1 = vld [vmem:[#allocation5 + $0x88] sm:$0xff]  ;;  %v749_v2 = vld [vmem:[#allocation5 + $0x80] sm:$0xff] }
  0x48   :  { %2106 = vmatpush3.msra.mxu0 %v97_v5  ;;  %2117 = vmatpush3.msra.mxu1 %v97_v5 }
  0x49   :  { %2121 = vmatprep.subr.mxu0 %v2534_v0  ;;  %2132 = vmatprep.subr.mxu1 %v2534_v0 }
  0x4e   :  { %v2380_v6 = vpop.eup %2379 }
  0x4f   :  { %2108 = vmatmul.mubr.msk.f32.vlgmr.msra.gmra.mxu0 %vm95_vm1, %v2380_v6 }
  0x50   :  { %2129 = vmatprep.mubr.msk.f32.mxu0 %vm2535_vm0, %v2534_v0  ;;  %2122 = vmatpush3.msra.mxu0 %v263_v14 }
  0x51   :  { %2123 = vmatprep.subr.mxu0 %v2534_v0 }
  0x52   :  { %2124 = vmatpush3.msra.mxu0 %v262_v15 }
  0x53   :  { %2125 = vmatprep.subr.mxu0 %v2534_v0 }
  0x54   :  { %2126 = vmatpush3.msra.mxu0 %v261_v16 }
  0x55   :  { %2127 = vmatprep.subr.mxu0 %v2534_v0 }
  0x56   :  { %2128 = vmatpush3.msra.mxu0 %v260_v17 }
  0x57   :  { %2143 = vmatprep.subr.mxu0 %v2534_v0 }
 0x10f   :  { %v177_v8 = vpop.f32.mrf.mxu0 }
 0x110   :  { %v178_v9 = vadd.f32 %v1942_v7, %v177_v8  ;;  %v1954_v8 = vld [vmem:[#allocation7 + $0x4] ss:$0 sm:$0xff] }
 0x111   :  { %v2109_v10 = vpop.f32.mrf.mxu0 }
 0x112   :  { %v181_v11 = vmul.f32 0.5, %v178_v9 }
 0x114   :  { %v182_v12 = vadd.f32 %v181_v11, %v94_v3 }
 0x116   :  { %2381 = vtanh.f32 %v182_v12 }
 0x123   :  { %v2382_v13 = vpop.eup %2381 }
 0x124   :  { %2119 = vmatmul.mubr.msk.f32.vlgmr.msra.gmra.mxu1 %vm95_vm1, %v2382_v13 }
 0x125   :  { %2140 = vmatprep.mubr.msk.f32.mxu1 %vm2535_vm0, %v2534_v0  ;;  %2133 = vmatpush3.msra.mxu1 %v263_v14 }
 0x126   :  { %2134 = vmatprep.subr.mxu1 %v2534_v0 }
 0x127   :  { %2135 = vmatpush3.msra.mxu1 %v262_v15  ;;  %v915_v15 = vld [vmem:[#allocation5 + $0xb8] sm:$0xff] }
 0x128   :  { %2136 = vmatprep.subr.mxu1 %v2534_v0 }
 0x129   :  { %2137 = vmatpush3.msra.mxu1 %v261_v16  ;;  %v914_v16 = vld [vmem:[#allocation5 + $0xb0] sm:$0xff] }
 0x12a   :  { %2138 = vmatprep.subr.mxu1 %v2534_v0 }
 0x12b   :  { %2139 = vmatpush3.msra.mxu1 %v260_v17  ;;  %v913_v17 = vld [vmem:[#allocation5 + $0xa8] sm:$0xff] }
 0x12c   :  { %2154 = vmatprep.subr.mxu1 %v2534_v0 }
 0x1e4   :  { %v253_v18 = vpop.f32.mrf.mxu1 }
 0x1e5   :  { %v254_v19 = vadd.f32 %v1942_v7, %v253_v18  ;;  %v912_v18 = vld [vmem:[#allocation5 + $0xa0] sm:$0xff] }
 0x1e6   :  { %v2120_v20 = vpop.f32.mrf.mxu1 }
 0x1e7   :  { %v257_v21 = vadd.f32 %v254_v19, %v94_v3 }
 0x1e9   :  { %258 = vst.msk [vmem:[#allocation2 + $0x8] sm:$0xff] %vm95_vm1, %v257_v21  ;;  %2383 = vtanh.f32 %v257_v21 }
 0x1f6   :  { %v2384_v22 = vpop.eup %2383 }
 0x1f7   :  { %2130 = vmatmul.mubr.msk.f32.vlgmr.msra.gmra.mxu0 %vm95_vm1, %v2384_v22 }
 0x1f8   :  { %2151 = vmatprep.mubr.msk.f32.mxu0 %vm2535_vm0, %v2534_v0  ;;  %2144 = vmatpush3.msra.mxu0 %v426_v30 }
 0x1f9   :  { %2145 = vmatprep.subr.mxu0 %v2534_v0 }
 0x1fa   :  { %2146 = vmatpush3.msra.mxu0 %v425_v31 }
 0x1fb   :  { %2147 = vmatprep.subr.mxu0 %v2534_v0 }
 0x1fc   :  { %2148 = vmatpush3.msra.mxu0 %v424_v32 }
 0x1fd   :  { %2149 = vmatprep.subr.mxu0 %v2534_v0 }
 0x1fe   :  { %2150 = vmatpush3.msra.mxu0 %v423_v33 }
 0x1ff   :  { %2165 = vmatprep.subr.mxu0 %v2534_v0 }
 0x2b7   :  { %v340_v24 = vpop.f32.mrf.mxu0 }
 0x2b8   :  { %v341_v25 = vadd.f32 %v1945_v23, %v340_v24  ;;  %v1957_v24 = vld [vmem:[#allocation7 + $0x5] ss:$0 sm:$0xff] }
 0x2b9   :  { %v2131_v26 = vpop.f32.mrf.mxu0 }
 0x2ba   :  { %v344_v27 = vmul.f32 0.5, %v341_v25 }
 0x2bc   :  { %v345_v28 = vadd.f32 %v344_v27, %v257_v21 }
 0x2be   :  { %2385 = vtanh.f32 %v345_v28 }
 0x2cb   :  { %v2386_v29 = vpop.eup %2385 }
 0x2cc   :  { %2141 = vmatmul.mubr.msk.f32.vlgmr.msra.gmra.mxu1 %vm95_vm1, %v2386_v29 }
 0x2cd   :  { %2162 = vmatprep.mubr.msk.f32.mxu1 %vm2535_vm0, %v2534_v0  ;;  %2155 = vmatpush3.msra.mxu1 %v426_v30 }
 0x2ce   :  { %2156 = vmatprep.subr.mxu1 %v2534_v0 }
 0x2cf   :  { %2157 = vmatpush3.msra.mxu1 %v425_v31  ;;  %v1078_v31 = vld [vmem:[#allocation5 + $0xd8] sm:$0xff] }
 0x2d0   :  { %2158 = vmatprep.subr.mxu1 %v2534_v0 }
 0x2d1   :  { %2159 = vmatpush3.msra.mxu1 %v424_v32  ;;  %v1077_v32 = vld [vmem:[#allocation5 + $0xd0] sm:$0xff] }
 0x2d2   :  { %2160 = vmatprep.subr.mxu1 %v2534_v0 }
 0x2d3   :  { %2161 = vmatpush3.msra.mxu1 %v423_v33  ;;  %v1076_v33 = vld [vmem:[#allocation5 + $0xc8] sm:$0xff] }
 0x2d4   :  { %2176 = vmatprep.subr.mxu1 %v2534_v0 }
 0x38c   :  { %v416_v34 = vpop.f32.mrf.mxu1 }
 0x38d   :  { %v417_v35 = vadd.f32 %v1945_v23, %v416_v34  ;;  %v1075_v34 = vld [vmem:[#allocation5 + $0xc0] sm:$0xff] }
 0x38e   :  { %v2142_v36 = vpop.f32.mrf.mxu1 }
 0x38f   :  { %v420_v37 = vadd.f32 %v417_v35, %v257_v21 }
 0x391   :  { %421 = vst.msk [vmem:[#allocation2 + $0x10] sm:$0xff] %vm95_vm1, %v420_v37  ;;  %2387 = vtanh.f32 %v420_v37 }
 0x39e   :  { %v2388_v38 = vpop.eup %2387 }
 0x39f   :  { %2152 = vmatmul.mubr.msk.f32.vlgmr.msra.gmra.mxu0 %vm95_vm1, %v2388_v38 }
 0x3a0   :  { %2173 = vmatprep.mubr.msk.f32.mxu0 %vm2535_vm0, %v2534_v0  ;;  %2166 = vmatpush3.msra.mxu0 %v589_v46 }
 0x3a1   :  { %2167 = vmatprep.subr.mxu0 %v2534_v0 }
 0x3a2   :  { %2168 = vmatpush3.msra.mxu0 %v588_v47 }
 0x3a3   :  { %2169 = vmatprep.subr.mxu0 %v2534_v0 }
 0x3a4   :  { %2170 = vmatpush3.msra.mxu0 %v587_v48 }
 0x3a5   :  { %2171 = vmatprep.subr.mxu0 %v2534_v0 }
 0x3a6   :  { %2172 = vmatpush3.msra.mxu0 %v586_v49 }
 0x3a7   :  { %2187 = vmatprep.subr.mxu0 %v2534_v0 }
 0x45f   :  { %v503_v40 = vpop.f32.mrf.mxu0 }
 0x460   :  { %v504_v41 = vadd.f32 %v1948_v39, %v503_v40  ;;  %v1960_v40 = vld [vmem:[#allocation7 + $0x6] ss:$0 sm:$0xff] }
 0x461   :  { %v2153_v42 = vpop.f32.mrf.mxu0 }
 0x462   :  { %v507_v43 = vmul.f32 0.5, %v504_v41 }
 0x464   :  { %v508_v44 = vadd.f32 %v507_v43, %v420_v37 }
 0x466   :  { %2389 = vtanh.f32 %v508_v44 }
 0x473   :  { %v2390_v45 = vpop.eup %2389 }
 0x474   :  { %2163 = vmatmul.mubr.msk.f32.vlgmr.msra.gmra.mxu1 %vm95_vm1, %v2390_v45 }
 0x475   :  { %2184 = vmatprep.mubr.msk.f32.mxu1 %vm2535_vm0, %v2534_v0  ;;  %2177 = vmatpush3.msra.mxu1 %v589_v46 }
 0x476   :  { %2178 = vmatprep.subr.mxu1 %v2534_v0 }
 0x477   :  { %2179 = vmatpush3.msra.mxu1 %v588_v47  ;;  %v1241_v47 = vld [vmem:[#allocation5 + $0xf8] sm:$0xff] }
 0x478   :  { %2180 = vmatprep.subr.mxu1 %v2534_v0 }
 0x479   :  { %2181 = vmatpush3.msra.mxu1 %v587_v48  ;;  %v1240_v48 = vld [vmem:[#allocation5 + $0xf0] sm:$0xff] }
 0x47a   :  { %2182 = vmatprep.subr.mxu1 %v2534_v0 }
 0x47b   :  { %2183 = vmatpush3.msra.mxu1 %v586_v49  ;;  %v1239_v49 = vld [vmem:[#allocation5 + $0xe8] sm:$0xff] }
 0x47c   :  { %2198 = vmatprep.subr.mxu1 %v2534_v0 }
 0x534   :  { %v579_v50 = vpop.f32.mrf.mxu1 }
 0x535   :  { %v580_v51 = vadd.f32 %v1948_v39, %v579_v50  ;;  %v1238_v50 = vld [vmem:[#allocation5 + $0xe0] sm:$0xff] }
 0x536   :  { %v2164_v52 = vpop.f32.mrf.mxu1 }
 0x537   :  { %v583_v53 = vadd.f32 %v580_v51, %v420_v37 }
 0x539   :  { %584 = vst.msk [vmem:[#allocation2 + $0x18] sm:$0xff] %vm95_vm1, %v583_v53  ;;  %2391 = vtanh.f32 %v583_v53 }
 0x546   :  { %v2392_v54 = vpop.eup %2391 }
 0x547   :  { %2174 = vmatmul.mubr.msk.f32.vlgmr.msra.gmra.mxu0 %vm95_vm1, %v2392_v54 }
 0x548   :  { %2195 = vmatprep.mubr.msk.f32.mxu0 %vm2535_vm0, %v2534_v0  ;;  %2188 = vmatpush3.msra.mxu0 %v752_v62 }
 0x549   :  { %2189 = vmatprep.subr.mxu0 %v2534_v0 }
 0x54a   :  { %2190 = vmatpush3.msra.mxu0 %v751_v63 }
 0x54b   :  { %2191 = vmatprep.subr.mxu0 %v2534_v0 }
 0x54c   :  { %2192 = vmatpush3.msra.mxu0 %v750_v1 }
 0x54d   :  { %2193 = vmatprep.subr.mxu0 %v2534_v0 }
 0x54e   :  { %2194 = vmatpush3.msra.mxu0 %v749_v2 }
 0x54f   :  { %2209 = vmatprep.subr.mxu0 %v2534_v0 }
 0x607   :  { %v666_v56 = vpop.f32.mrf.mxu0 }
 0x608   :  { %v667_v57 = vadd.f32 %v1951_v55, %v666_v56  ;;  %v1963_v56 = vld [vmem:[#allocation7 + $0x7] ss:$0 sm:$0xff] }
 0x609   :  { %v2175_v58 = vpop.f32.mrf.mxu0 }
 0x60a   :  { %v670_v59 = vmul.f32 0.5, %v667_v57 }
 0x60c   :  { %v671_v60 = vadd.f32 %v670_v59, %v583_v53 }
 0x60e   :  { %2393 = vtanh.f32 %v671_v60 }
 0x61b   :  { %v2394_v61 = vpop.eup %2393 }
 0x61c   :  { %2185 = vmatmul.mubr.msk.f32.vlgmr.msra.gmra.mxu1 %vm95_vm1, %v2394_v61 }
 0x61d   :  { %2206 = vmatprep.mubr.msk.f32.mxu1 %vm2535_vm0, %v2534_v0  ;;  %2199 = vmatpush3.msra.mxu1 %v752_v62 }
 0x61e   :  { %2200 = vmatprep.subr.mxu1 %v2534_v0 }
 0x61f   :  { %2201 = vmatpush3.msra.mxu1 %v751_v63  ;;  %v1404_v63 = vld [vmem:[#allocation5 + $0x118] sm:$0xff] }
 0x620   :  { %2202 = vmatprep.subr.mxu1 %v2534_v0 }
 0x621   :  { %2203 = vmatpush3.msra.mxu1 %v750_v1  ;;  %v1403_v1 = vld [vmem:[#allocation5 + $0x110] sm:$0xff] }
 0x622   :  { %2204 = vmatprep.subr.mxu1 %v2534_v0 }
 0x623   :  { %2205 = vmatpush3.msra.mxu1 %v749_v2  ;;  %v1402_v2 = vld [vmem:[#allocation5 + $0x108] sm:$0xff] }
 0x624   :  { %2220 = vmatprep.subr.mxu1 %v2534_v0 }
 0x6dc   :  { %v742_v3 = vpop.f32.mrf.mxu1 }
 0x6dd   :  { %v743_v4 = vadd.f32 %v1951_v55, %v742_v3  ;;  %v1401_v3 = vld [vmem:[#allocation5 + $0x100] sm:$0xff] }
 0x6de   :  { %v2186_v5 = vpop.f32.mrf.mxu1 }
 0x6df   :  { %v746_v6 = vadd.f32 %v743_v4, %v583_v53 }
 0x6e1   :  { %747 = vst.msk [vmem:[#allocation2 + $0x20] sm:$0xff] %vm95_vm1, %v746_v6  ;;  %2395 = vtanh.f32 %v746_v6 }
 0x6ee   :  { %v2396_v7 = vpop.eup %2395 }
 0x6ef   :  { %2196 = vmatmul.mubr.msk.f32.vlgmr.msra.gmra.mxu0 %vm95_vm1, %v2396_v7 }
 0x6f0   :  { %2217 = vmatprep.mubr.msk.f32.mxu0 %vm2535_vm0, %v2534_v0  ;;  %2210 = vmatpush3.msra.mxu0 %v915_v15 }
 0x6f1   :  { %2211 = vmatprep.subr.mxu0 %v2534_v0 }
 0x6f2   :  { %2212 = vmatpush3.msra.mxu0 %v914_v16 }
 0x6f3   :  { %2213 = vmatprep.subr.mxu0 %v2534_v0 }
 0x6f4   :  { %2214 = vmatpush3.msra.mxu0 %v913_v17 }
 0x6f5   :  { %2215 = vmatprep.subr.mxu0 %v2534_v0 }
 0x6f6   :  { %2216 = vmatpush3.msra.mxu0 %v912_v18 }
 0x6f7   :  { %2231 = vmatprep.subr.mxu0 %v2534_v0 }
 0x7af   :  { %v829_v9 = vpop.f32.mrf.mxu0 }
 0x7b0   :  { %v830_v10 = vadd.f32 %v1954_v8, %v829_v9  ;;  %v1966_v9 = vld [vmem:[#allocation7 + $0x8] ss:$0 sm:$0xff] }
 0x7b1   :  { %v2197_v11 = vpop.f32.mrf.mxu0 }
 0x7b2   :  { %v833_v12 = vmul.f32 0.5, %v830_v10 }
 0x7b4   :  { %v834_v13 = vadd.f32 %v833_v12, %v746_v6 }
 0x7b6   :  { %2397 = vtanh.f32 %v834_v13 }
 0x7c3   :  { %v2398_v14 = vpop.eup %2397 }
 0x7c4   :  { %2207 = vmatmul.mubr.msk.f32.vlgmr.msra.gmra.mxu1 %vm95_vm1, %v2398_v14 }
 0x7c5   :  { %2228 = vmatprep.mubr.msk.f32.mxu1 %vm2535_vm0, %v2534_v0  ;;  %2221 = vmatpush3.msra.mxu1 %v915_v15 }
 0x7c6   :  { %2222 = vmatprep.subr.mxu1 %v2534_v0 }
 0x7c7   :  { %2223 = vmatpush3.msra.mxu1 %v914_v16  ;;  %v1567_v16 = vld [vmem:[#allocation5 + $0x138] sm:$0xff] }
 0x7c8   :  { %2224 = vmatprep.subr.mxu1 %v2534_v0 }
 0x7c9   :  { %2225 = vmatpush3.msra.mxu1 %v913_v17  ;;  %v1566_v17 = vld [vmem:[#allocation5 + $0x130] sm:$0xff] }
 0x7ca   :  { %2226 = vmatprep.subr.mxu1 %v2534_v0 }
 0x7cb   :  { %2227 = vmatpush3.msra.mxu1 %v912_v18  ;;  %v1565_v18 = vld [vmem:[#allocation5 + $0x128] sm:$0xff] }
 0x7cc   :  { %2242 = vmatprep.subr.mxu1 %v2534_v0 }
 0x884   :  { %v905_v19 = vpop.f32.mrf.mxu1 }
 0x885   :  { %v906_v20 = vadd.f32 %v1954_v8, %v905_v19  ;;  %v1564_v19 = vld [vmem:[#allocation5 + $0x120] sm:$0xff] }
 0x886   :  { %v2208_v21 = vpop.f32.mrf.mxu1 }
 0x887   :  { %v909_v22 = vadd.f32 %v906_v20, %v746_v6 }
 0x889   :  { %910 = vst.msk [vmem:[#allocation2 + $0x28] sm:$0xff] %vm95_vm1, %v909_v22  ;;  %2399 = vtanh.f32 %v909_v22 }
 0x896   :  { %v2400_v23 = vpop.eup %2399 }
 0x897   :  { %2218 = vmatmul.mubr.msk.f32.vlgmr.msra.gmra.mxu0 %vm95_vm1, %v2400_v23 }
 0x898   :  { %2239 = vmatprep.mubr.msk.f32.mxu0 %vm2535_vm0, %v2534_v0  ;;  %2232 = vmatpush3.msra.mxu0 %v1078_v31 }
 0x899   :  { %2233 = vmatprep.subr.mxu0 %v2534_v0 }
 0x89a   :  { %2234 = vmatpush3.msra.mxu0 %v1077_v32 }
 0x89b   :  { %2235 = vmatprep.subr.mxu0 %v2534_v0 }
 0x89c   :  { %2236 = vmatpush3.msra.mxu0 %v1076_v33 }
 0x89d   :  { %2237 = vmatprep.subr.mxu0 %v2534_v0 }
 0x89e   :  { %2238 = vmatpush3.msra.mxu0 %v1075_v34 }
 0x89f   :  { %2253 = vmatprep.subr.mxu0 %v2534_v0 }
 0x957   :  { %v992_v25 = vpop.f32.mrf.mxu0 }
 0x958   :  { %v993_v26 = vadd.f32 %v1957_v24, %v992_v25 }
 0x959   :  { %v2219_v27 = vpop.f32.mrf.mxu0 }
 0x95a   :  { %v996_v28 = vmul.f32 0.5, %v993_v26  ;;  %v1739_v26 = vld [vmem:[#allocation8 + $0x10] sm:$0xff]  ;;  %v1738_v27 = vld [vmem:[#allocation8 + $0x8] sm:$0xff] }
 0x95c   :  { %v997_v29 = vadd.f32 %v996_v28, %v909_v22  ;;  %v1737_v28 = vld [vmem:[#allocation8] sm:$0xff] }
 0x95e   :  { %2401 = vtanh.f32 %v997_v29  ;;  %v1726_v29 = vld [vmem:[#allocation2] sm:$0xff] }
 0x96b   :  { %v2402_v30 = vpop.eup %2401 }
 0x96c   :  { %2229 = vmatmul.mubr.msk.f32.vlgmr.msra.gmra.mxu1 %vm95_vm1, %v2402_v30  ;;  %v1727_v30 = vld [vmem:[#allocation2 + $0x8] sm:$0xff] }
 0x96d   :  { %2250 = vmatprep.mubr.msk.f32.mxu1 %vm2535_vm0, %v2534_v0  ;;  %2243 = vmatpush3.msra.mxu1 %v1078_v31  ;;  %v1728_v31 = vld [vmem:[#allocation2 + $0x10] sm:$0xff] }
 0x96e   :  { %2244 = vmatprep.subr.mxu1 %v2534_v0 }
 0x96f   :  { %2245 = vmatpush3.msra.mxu1 %v1077_v32  ;;  %v1729_v32 = vld [vmem:[#allocation2 + $0x18] sm:$0xff] }
 0x970   :  { %2246 = vmatprep.subr.mxu1 %v2534_v0 }
 0x971   :  { %2247 = vmatpush3.msra.mxu1 %v1076_v33  ;;  %v1730_v33 = vld [vmem:[#allocation2 + $0x20] sm:$0xff] }
 0x972   :  { %2248 = vmatprep.subr.mxu1 %v2534_v0 }
 0x973   :  { %2249 = vmatpush3.msra.mxu1 %v1075_v34  ;;  %v1731_v34 = vld [vmem:[#allocation2 + $0x28] sm:$0xff] }
 0x974   :  { %2264 = vmatprep.subr.mxu1 %v2534_v0 }
 0xa2c   :  { %v1068_v35 = vpop.f32.mrf.mxu1 }
 0xa2d   :  { %v1069_v36 = vadd.f32 %v1957_v24, %v1068_v35  ;;  %v1740_v24 = vld [vmem:[#allocation8 + $0x18] sm:$0xff] }
 0xa2e   :  { %v2230_v37 = vpop.f32.mrf.mxu1  ;;  %v2757_v35 = vld [vmem:[#allocation7 + $0x9] ss:$0 sm:$0xff] }
 0xa2f   :  { %v1072_v38 = vadd.f32 %v1069_v36, %v909_v22 }
 0xa31   :  { %1073 = vst.msk [vmem:[#allocation2 + $0x30] sm:$0xff] %vm95_vm1, %v1072_v38  ;;  %2403 = vtanh.f32 %v1072_v38 }
 0xa3e   :  { %v2404_v39 = vpop.eup %2403 }
 0xa3f   :  { %2240 = vmatmul.mubr.msk.f32.vlgmr.msra.gmra.mxu0 %vm95_vm1, %v2404_v39 }
 0xa40   :  { %2261 = vmatprep.mubr.msk.f32.mxu0 %vm2535_vm0, %v2534_v0  ;;  %2254 = vmatpush3.msra.mxu0 %v1241_v47 }
 0xa41   :  { %2255 = vmatprep.subr.mxu0 %v2534_v0 }
 0xa42   :  { %2256 = vmatpush3.msra.mxu0 %v1240_v48 }
 0xa43   :  { %2257 = vmatprep.subr.mxu0 %v2534_v0 }
 0xa44   :  { %2258 = vmatpush3.msra.mxu0 %v1239_v49 }
 0xa45   :  { %2259 = vmatprep.subr.mxu0 %v2534_v0 }
 0xa46   :  { %2260 = vmatpush3.msra.mxu0 %v1238_v50 }
 0xa47   :  { %2275 = vmatprep.subr.mxu0 %v2534_v0 }
 0xaff   :  { %v1155_v41 = vpop.f32.mrf.mxu0 }
 0xb00   :  { %v1156_v42 = vadd.f32 %v1960_v40, %v1155_v41  ;;  %v2761_v41 = vld [vmem:[#allocation10] ss:$0 sm:$0xff] }
 0xb01   :  { %v2241_v43 = vpop.f32.mrf.mxu0 }
 0xb02   :  { %v1159_v44 = vmul.f32 0.5, %v1156_v42 }
 0xb04   :  { %v1160_v45 = vadd.f32 %v1159_v44, %v1072_v38 }
 0xb06   :  { %2405 = vtanh.f32 %v1160_v45 }
 0xb13   :  { %v2406_v46 = vpop.eup %2405 }
 0xb14   :  { %2251 = vmatmul.mubr.msk.f32.vlgmr.msra.gmra.mxu1 %vm95_vm1, %v2406_v46 }
 0xb15   :  { %2272 = vmatprep.mubr.msk.f32.mxu1 %vm2535_vm0, %v2534_v0  ;;  %2265 = vmatpush3.msra.mxu1 %v1241_v47 }
 0xb16   :  { %2266 = vmatprep.subr.mxu1 %v2534_v0 }
 0xb17   :  { %2267 = vmatpush3.msra.mxu1 %v1240_v48 }
 0xb18   :  { %2268 = vmatprep.subr.mxu1 %v2534_v0 }
 0xb19   :  { %2269 = vmatpush3.msra.mxu1 %v1239_v49 }
 0xb1a   :  { %2270 = vmatprep.subr.mxu1 %v2534_v0 }
 0xb1b   :  { %2271 = vmatpush3.msra.mxu1 %v1238_v50 }
 0xb1c   :  { %2286 = vmatprep.subr.mxu1 %v2534_v0 }
 0xbd4   :  { %v1231_v51 = vpop.f32.mrf.mxu1 }
 0xbd5   :  { %v1232_v52 = vadd.f32 %v1960_v40, %v1231_v51 }
 0xbd6   :  { %v2252_v53 = vpop.f32.mrf.mxu1 }
 0xbd7   :  { %v1235_v54 = vadd.f32 %v1232_v52, %v1072_v38 }
 0xbd9   :  { %1236 = vst.msk [vmem:[#allocation2 + $0x38] sm:$0xff] %vm95_vm1, %v1235_v54  ;;  %2407 = vtanh.f32 %v1235_v54 }
 0xbe6   :  { %v2408_v55 = vpop.eup %2407 }
 0xbe7   :  { %2262 = vmatmul.mubr.msk.f32.vlgmr.msra.gmra.mxu0 %vm95_vm1, %v2408_v55 }
 0xbe8   :  { %2283 = vmatprep.mubr.msk.f32.mxu0 %vm2535_vm0, %v2534_v0  ;;  %2276 = vmatpush3.msra.mxu0 %v1404_v63 }
 0xbe9   :  { %2277 = vmatprep.subr.mxu0 %v2534_v0 }
 0xbea   :  { %2278 = vmatpush3.msra.mxu0 %v1403_v1 }
 0xbeb   :  { %2279 = vmatprep.subr.mxu0 %v2534_v0 }
 0xbec   :  { %2280 = vmatpush3.msra.mxu0 %v1402_v2 }
 0xbed   :  { %2281 = vmatprep.subr.mxu0 %v2534_v0 }
 0xbee   :  { %2282 = vmatpush3.msra.mxu0 %v1401_v3 }
 0xbef   :  { %2297 = vmatprep.subr.mxu0 %v2534_v0 }
 0xca7   :  { %v1318_v57 = vpop.f32.mrf.mxu0 }
 0xca8   :  { %v1319_v58 = vadd.f32 %v1963_v56, %v1318_v57 }
 0xca9   :  { %v2263_v59 = vpop.f32.mrf.mxu0 }
 0xcaa   :  { %v1322_v60 = vmul.f32 0.5, %v1319_v58 }
 0xcac   :  { %v1323_v61 = vadd.f32 %v1322_v60, %v1235_v54 }
 0xcae   :  { %2409 = vtanh.f32 %v1323_v61 }
 0xcbb   :  { %v2410_v62 = vpop.eup %2409 }
 0xcbc   :  { %2273 = vmatmul.mubr.msk.f32.vlgmr.msra.gmra.mxu1 %vm95_vm1, %v2410_v62 }
 0xcbd   :  { %2294 = vmatprep.mubr.msk.f32.mxu1 %vm2535_vm0, %v2534_v0  ;;  %2287 = vmatpush3.msra.mxu1 %v1404_v63 }
 0xcbe   :  { %2288 = vmatprep.subr.mxu1 %v2534_v0 }
 0xcbf   :  { %2289 = vmatpush3.msra.mxu1 %v1403_v1 }
 0xcc0   :  { %2290 = vmatprep.subr.mxu1 %v2534_v0 }
 0xcc1   :  { %2291 = vmatpush3.msra.mxu1 %v1402_v2 }
 0xcc2   :  { %2292 = vmatprep.subr.mxu1 %v2534_v0 }
 0xcc3   :  { %2293 = vmatpush3.msra.mxu1 %v1401_v3  ;;  %v1732_v3 = vld [vmem:[#allocation2 + $0x30] sm:$0xff] }
 0xcc4   :  { %2308 = vmatprep.subr.mxu1 %v2534_v0 }
 0xd7c   :  { %v1394_v4 = vpop.f32.mrf.mxu1 }
 0xd7d   :  { %v1395_v5 = vadd.f32 %v1963_v56, %v1394_v4 }
 0xd7e   :  { %v2274_v6 = vpop.f32.mrf.mxu1 }
 0xd7f   :  { %v1398_v7 = vadd.f32 %v1395_v5, %v1235_v54 }
 0xd81   :  { %1399 = vst.msk [vmem:[#allocation2 + $0x40] sm:$0xff] %vm95_vm1, %v1398_v7  ;;  %2411 = vtanh.f32 %v1398_v7 }
 0xd8e   :  { %v2412_v8 = vpop.eup %2411 }
 0xd8f   :  { %2284 = vmatmul.mubr.msk.f32.vlgmr.msra.gmra.mxu0 %vm95_vm1, %v2412_v8 }
 0xd90   :  { %2305 = vmatprep.mubr.msk.f32.mxu0 %vm2535_vm0, %v2534_v0  ;;  %2298 = vmatpush3.msra.mxu0 %v1567_v16 }
 0xd91   :  { %2299 = vmatprep.subr.mxu0 %v2534_v0 }
 0xd92   :  { %2300 = vmatpush3.msra.mxu0 %v1566_v17 }
 0xd93   :  { %2301 = vmatprep.subr.mxu0 %v2534_v0 }
 0xd94   :  { %2302 = vmatpush3.msra.mxu0 %v1565_v18 }
 0xd95   :  { %2303 = vmatprep.subr.mxu0 %v2534_v0 }
 0xd96   :  { %2304 = vmatpush3.msra.mxu0 %v1564_v19 }
 0xd97   :  { %2319 = vmatprep.subr.mxu0 %v2534_v0 }
 0xe4f   :  { %v1481_v10 = vpop.f32.mrf.mxu0 }
 0xe50   :  { %v1482_v11 = vadd.f32 %v1966_v9, %v1481_v10 }
 0xe51   :  { %v2285_v12 = vpop.f32.mrf.mxu0 }
 0xe52   :  { %v1485_v13 = vmul.f32 0.5, %v1482_v11  ;;  %v1734_v12 = vld [vmem:[#allocation2 + $0x40] sm:$0xff] }
 0xe54   :  { %v1486_v14 = vadd.f32 %v1485_v13, %v1398_v7 }
 0xe56   :  { %2413 = vtanh.f32 %v1486_v14 }
 0xe63   :  { %v2414_v15 = vpop.eup %2413 }
 0xe64   :  { %2295 = vmatmul.mubr.msk.f32.vlgmr.msra.gmra.mxu1 %vm95_vm1, %v2414_v15 }
 0xe65   :  { %2316 = vmatprep.mubr.msk.f32.mxu1 %vm2535_vm0, %v2534_v0  ;;  %2309 = vmatpush3.msra.mxu1 %v1567_v16 }
 0xe66   :  { %2310 = vmatprep.subr.mxu1 %v2534_v0 }
 0xe67   :  { %2311 = vmatpush3.msra.mxu1 %v1566_v17 }
 0xe68   :  { %2312 = vmatprep.subr.mxu1 %v2534_v0 }
 0xe69   :  { %2313 = vmatpush3.msra.mxu1 %v1565_v18 }
 0xe6a   :  { %2314 = vmatprep.subr.mxu1 %v2534_v0 }
 0xe6b   :  { %2315 = vmatpush3.msra.mxu1 %v1564_v19 }
 0xe6c   :  { %2360 = vmatprep.subr.mxu1 %v2534_v0 }
 0xf24   :  { %v1557_v20 = vpop.f32.mrf.mxu1 }
 0xf25   :  { %v1558_v21 = vadd.f32 %v1966_v9, %v1557_v20  ;;  %v1733_v9 = vld [vmem:[#allocation2 + $0x38] sm:$0xff] }
 0xf26   :  { %v2296_v22 = vpop.f32.mrf.mxu1 }
 0xf27   :  { %v2730_v23 = vadd.f32 %v1558_v21, %v1398_v7 }
 0xf29   :  { %1562 = vst.msk [vmem:[#allocation2 + $0x48] sm:$0xff] %vm95_vm1, %v2730_v23  ;;  %2415 = vtanh.f32 %v2730_v23 }
 0xf30   :  { %v1735_v13 = vld [vmem:[#allocation2 + $0x48] sm:$0xff] }
 0xf36   :  { %v2416_v25 = vpop.eup %2415 }
 0xf37   :  { %2306 = vmatmul.mubr.msk.f32.vlgmr.msra.gmra.mxu0 %vm95_vm1, %v2416_v25 }
 0xf38   :  { %2320 = vmatpush3.msra.mxu0 %v1740_v24  ;;  %2327 = vmatprep.mubr.msk.f32.mxu0 %vm2535_vm0, %v2534_v0 }
 0xf39   :  { %2321 = vmatprep.subr.mxu0 %v2534_v0 }
 0xf3a   :  { %2322 = vmatpush3.msra.mxu0 %v1739_v26 }
 0xf3b   :  { %2323 = vmatprep.subr.mxu0 %v2534_v0 }
 0xf3c   :  { %2324 = vmatpush3.msra.mxu0 %v1738_v27 }
 0xf3d   :  { %2325 = vmatprep.subr.mxu0 %v2534_v0 }
 0xf3e   :  { %2326 = vmatpush3.msra.mxu0 %v1737_v28 }
 0xf3f   :  { %2328 = vmatmul.mubr.msk.f32.vlgmr.msra.gmra.mxu0 %vm95_vm1, %v1726_v29 }
 0xf40   :  { %2330 = vmatprep.mubr.msk.f32.mxu0 %vm2535_vm0, %v2534_v0 }
 0xf43   :  { %2331 = vmatmul.mubr.msk.f32.gmra.mxu0 %vm95_vm1, %v1727_v30 }
 0xf44   :  { %2333 = vmatprep.mubr.msk.f32.mxu0 %vm2535_vm0, %v2534_v0 }
 0xf47   :  { %2334 = vmatmul.mubr.msk.f32.gmra.mxu0 %vm95_vm1, %v1728_v31 }
 0xf48   :  { %2336 = vmatprep.mubr.msk.f32.mxu0 %vm2535_vm0, %v2534_v0 }
 0xf4b   :  { %2337 = vmatmul.mubr.msk.f32.gmra.mxu0 %vm95_vm1, %v1729_v32 }
 0xf4c   :  { %2339 = vmatprep.mubr.msk.f32.mxu0 %vm2535_vm0, %v2534_v0 }
 0xf4f   :  { %2340 = vmatmul.mubr.msk.f32.gmra.mxu0 %vm95_vm1, %v1730_v33 }
 0xf50   :  { %2342 = vmatprep.mubr.msk.f32.mxu0 %vm2535_vm0, %v2534_v0 }
 0xf53   :  { %2343 = vmatmul.mubr.msk.f32.gmra.mxu0 %vm95_vm1, %v1731_v34 }
 0xff7   :  { %v1644_v36 = vpop.f32.mrf.mxu0 }
 0xff8   :  { %v1645_v37 = vadd.f32 %v2757_v35, %v1644_v36 }
 0xff9   :  { %v2307_v38 = vpop.f32.mrf.mxu0 }
 0xffa   :  { %v1648_v39 = vmul.f32 0.5, %v1645_v37 }
 0xffc   :  { %v1649_v40 = vadd.f32 %v1648_v39, %v2730_v23 }
 0xffe   :  { %2417 = vtanh.f32 %v1649_v40 }
 0xfff   :  { %v1847_v42 = vpop.f32.mrf.mxu0 }
0x1000   :  { %v1848_v43 = vadd.f32 %v2761_v41, %v1847_v42 }
0x1001   :  { %v2329_v44 = vpop.f32.mrf.mxu0 }
0x1002   :  { %1925 = vst [vmem:[%s2831_s5] sm:$0xff] %v1848_v43 }
0x1003   :  { %v1852_v45 = vpop.f32.mrf.mxu0 }
0x1004   :  { %v1853_v48 = vadd.f32 %v2761_v41, %v1852_v45 }
0x1005   :  { %v2332_v46 = vpop.f32.mrf.mxu0 }
0x1007   :  { %v1857_v47 = vpop.f32.mrf.mxu0 }
0x1008   :  { %v1858_v49 = vadd.f32 %v2761_v41, %v1857_v47 }
0x1009   :  { %v2335_v50 = vpop.f32.mrf.mxu0 }
0x100a   :  { %v1901_v51 = vsub.f32 %v1858_v49, %v1853_v48 }
0x100b   :  { %v2418_v52 = vpop.eup %2417  ;;  %v1862_v53 = vpop.f32.mrf.mxu0 }
0x100c   :  { %v1902_v54 = vmul.f32 0.11111111, %v1901_v51  ;;  %v1863_v55 = vadd.f32 %v2761_v41, %v1862_v53  ;;  %2317 = vmatmul.mubr.msk.f32.vlgmr.msra.gmra.mxu1 %vm95_vm1, %v2418_v52 }
0x100d   :  { %2364 = vmatpush3.msra.mxu1 %v1740_v24  ;;  %v2338_v56 = vpop.f32.mrf.mxu0  ;;  %2345 = vmatprep.mubr.msk.f32.mxu1 %vm2535_vm0, %v2534_v0 }
0x100e   :  { %v1903_v57 = vadd.f32 %v1902_v54, %v1853_v48  ;;  %v1904_v58 = vsub.f32 %v1863_v55, %v1858_v49  ;;  %2361 = vmatprep.subr.mxu1 %v2534_v0 }
0x100f   :  { %2365 = vmatpush3.msra.mxu1 %v1739_v26  ;;  %v1867_v59 = vpop.f32.mrf.mxu0 }
0x1010   :  { %1926 = vst [vmem:[%s2831_s5 + $0x8] sm:$0xff] %v1903_v57  ;;  %v1905_v60 = vmul.f32 0.22222222, %v1904_v58  ;;  %v1868_v61 = vadd.f32 %v2761_v41, %v1867_v59  ;;  %2362 = vmatprep.subr.mxu1 %v2534_v0 }
0x1011   :  { %2366 = vmatpush3.msra.mxu1 %v1738_v27  ;;  %v2341_v62 = vpop.f32.mrf.mxu0 }
0x1012   :  { %v1906_v63 = vadd.f32 %v1905_v60, %v1858_v49  ;;  %v1907_v1 = vsub.f32 %v1868_v61, %v1863_v55  ;;  %2363 = vmatprep.subr.mxu1 %v2534_v0 }
0x1013   :  { %2367 = vmatpush3.msra.mxu1 %v1737_v28  ;;  %v1872_v2 = vpop.f32.mrf.mxu0 }
0x1014   :  { %1927 = vst [vmem:[%s2831_s5 + $0x10] sm:$0xff] %v1906_v63  ;;  %v1908_v4 = vmul.f32 0.33333334, %v1907_v1  ;;  %v1873_v5 = vadd.f32 %v2761_v41, %v1872_v2  ;;  %2346 = vmatmul.mubr.msk.f32.vlgmr.msra.gmra.mxu1 %vm95_vm1, %v1732_v3 }
0x1015   :  { %v2344_v6 = vpop.f32.mrf.mxu0  ;;  %2348 = vmatprep.mubr.msk.f32.mxu1 %vm2535_vm0, %v2534_v0 }
0x1016   :  { %v1909_v7 = vadd.f32 %v1908_v4, %v1863_v55  ;;  %v1910_v8 = vsub.f32 %v1873_v5, %v1868_v61 }
0x1018   :  { %1928 = vst [vmem:[%s2831_s5 + $0x18] sm:$0xff] %v1909_v7  ;;  %v1911_v10 = vmul.f32 0.44444445, %v1910_v8  ;;  %2349 = vmatmul.mubr.msk.f32.gmra.mxu1 %vm95_vm1, %v1733_v9 }
0x1019   :  { %2351 = vmatprep.mubr.msk.f32.mxu1 %vm2535_vm0, %v2534_v0 }
0x101a   :  { %v1912_v11 = vadd.f32 %v1911_v10, %v1868_v61 }
0x101c   :  { %1929 = vst [vmem:[%s2831_s5 + $0x20] sm:$0xff] %v1912_v11  ;;  %2352 = vmatmul.mubr.msk.f32.gmra.mxu1 %vm95_vm1, %v1734_v12 }
0x101d   :  { %2354 = vmatprep.mubr.msk.f32.mxu1 %vm2535_vm0, %v2534_v0 }
0x1020   :  { %2355 = vmatmul.mubr.msk.f32.gmra.mxu1 %vm95_vm1, %v1735_v13 }
0x1021   :  { %2357 = vmatprep.mubr.msk.f32.mxu1 %vm2535_vm0, %v2534_v0 }
0x10cc   :  { %v1720_v14 = vpop.f32.mrf.mxu1 }
0x10cd   :  { %v1721_v15 = vadd.f32 %v2757_v35, %v1720_v14 }
0x10ce   :  { %v2318_v16 = vpop.f32.mrf.mxu1 }
0x10cf   :  { %v1724_v17 = vadd.f32 %v1721_v15, %v2730_v23 }
0x10d1   :  { %1725 = vst.msk [vmem:[#allocation2 + $0x50] sm:$0xff] %vm95_vm1, %v1724_v17 }
0x10d4   :  { %v1877_v18 = vpop.f32.mrf.mxu1 }
0x10d5   :  { %v1878_v19 = vadd.f32 %v2761_v41, %v1877_v18 }
0x10d6   :  { %v2347_v20 = vpop.f32.mrf.mxu1 }
0x10d7   :  { %v1913_v21 = vsub.f32 %v1878_v19, %v1873_v5 }
0x10d8   :  { %v1882_v22 = vpop.f32.mrf.mxu1  ;;  %v1736_v24 = vld [vmem:[#allocation2 + $0x50] sm:$0xff] }
0x10d9   :  { %v1914_v25 = vmul.f32 0.5555556, %v1913_v21  ;;  %v1883_v26 = vadd.f32 %v2761_v41, %v1882_v22  ;;  %2358 = vmatmul.mubr.msk.f32.gmra.mxu1 %vm95_vm1, %v1736_v24 }
0x10da   :  { %v2350_v0 = vpop.f32.mrf.mxu1 }
0x10db   :  { %v1915_v27 = vadd.f32 %v1914_v25, %v1873_v5  ;;  %v1916_v28 = vsub.f32 %v1883_v26, %v1878_v19 }
0x10dc   :  { %v1887_v29 = vpop.f32.mrf.mxu1 }
0x10dd   :  { %1930 = vst [vmem:[%s2831_s5 + $0x28] sm:$0xff] %v1915_v27  ;;  %v1917_v23 = vmul.f32 0.6666667, %v1916_v28  ;;  %v1888_v30 = vadd.f32 %v2761_v41, %v1887_v29 }
0x10de   :  { %v2353_v31 = vpop.f32.mrf.mxu1 }
0x10df   :  { %v1918_v32 = vadd.f32 %v1917_v23, %v1878_v19  ;;  %v1919_v33 = vsub.f32 %v1888_v30, %v1883_v26 }
0x10e0   :  { %v1892_v34 = vpop.f32.mrf.mxu1 }
0x10e1   :  { %1931 = vst [vmem:[%s2831_s5 + $0x30] sm:$0xff] %v1918_v32  ;;  %v1920_v35 = vmul.f32 0.7777778, %v1919_v33  ;;  %v1893_v36 = vadd.f32 %v2761_v41, %v1892_v34 }
0x10e2   :  { %v2356_v37 = vpop.f32.mrf.mxu1 }
0x10e3   :  { %v1921_v38 = vadd.f32 %v1920_v35, %v1883_v26  ;;  %v1922_v39 = vsub.f32 %v1893_v36, %v1888_v30 }
0x10e5   :  { %1932 = vst [vmem:[%s2831_s5 + $0x38] sm:$0xff] %v1921_v38  ;;  %v1923_v40 = vmul.f32 0.8888889, %v1922_v39 }
0x10e7   :  { %v1924_v42 = vadd.f32 %v1923_v40, %v1888_v30 }
0x10e9   :  { %1933 = vst [vmem:[%s2831_s5 + $0x40] sm:$0xff] %v1924_v42 }
0x1199   :  { %v1897_v43 = vpop.f32.mrf.mxu1 }
0x119a   :  { %v1898_v44 = vadd.f32 %v2761_v41, %v1897_v43 }
0x119b   :  { %v2359_v45 = vpop.f32.mrf.mxu1 }
0x119c   :  { %1934 = vst [vmem:[%s2831_s5 + $0x48] sm:$0xff] %v1898_v44 }
0x119d   :  { %1939 = vsyncpa [#allocation4], 1 }
0x119e   :  { %1940 = vsyncpa [#allocation6], 1 }
0x119f   :  { %1941 = vsyncpa [#allocation9], 1 }

</bundles_post_ra>
